<compile_context>
chip_gen: v5e
topology: v5e:2x2
jax: 0.10.0
libtpu: 0.0.40
codegen_flags: <defaults>
</compile_context>

<pallas_src>
import functools

import jax
import jax.numpy as jnp
import numpy as np
from jax.experimental import pallas as pl
from jax.experimental.pallas import tpu as pltpu

INPUT_SIZE = 6    # len(features)
HIDDEN = 64
NUM_LAYERS = 2
OUTPUT = 1


def lstm_kernel(x2_ref, wih0_ref, b0_ref, whh0_ref, wih1_ref, whh1_ref,
                b1_ref, wfc_ref, bfc_ref, out_ref, *, seq_len, batch, batch_padded):
    H = HIDDEN
    T = seq_len
    B = batch
    BP = batch_padded   # multiple of 8 -> sublane-aligned per-step slices

    # ---- Off-critical-path precompute: layer-0 input projection for ALL timesteps.
    # x2 is time-major, batch-padded, flattened (T*BP, I) in bf16; one MXU pass,
    # f32 accumulation, bias b0 folded in here.
    xg0 = (jnp.dot(x2_ref[...], wih0_ref[...],
                   preferred_element_type=jnp.float32)
           + b0_ref[...])                                        # (T*BP, 4H) f32

    # ---- Hoist the layer-1 bias broadcast out of the loop (no CSE of broadcasts).
    b1b = jnp.broadcast_to(b1_ref[...], (BP, 4 * H))             # (BP, 4H) f32

    # ---- States live in vregs as loop carries (zeros, matching torch.zeros h0/c0).
    zeros = jnp.zeros((BP, H), jnp.float32)
    h0, c0, h1, c1 = zeros, zeros, zeros, zeros

    def gates(g, c):
        # Gate columns are pre-ordered offline to [i, f, o, g]:
        # one wide sigmoid (3H lanes, via a single tanh EUP op) + one tanh (H lanes).
        s = 0.5 * jnp.tanh(0.5 * g[:, :3 * H]) + 0.5
        i = s[:, 0 * H:1 * H]
        f = s[:, 1 * H:2 * H]
        o = s[:, 2 * H:3 * H]
        gg = jnp.tanh(g[:, 3 * H:4 * H])
        c_new = f * c + i * gg
        h_new = o * jnp.tanh(c_new)
        return h_new, c_new

    # ---- Fully-unrolled recurrence (T is a small static constant).
    for t in range(T):
        # Layer-1 recurrent term: depends only on the PREVIOUS h1, so this MXU push
        # overlaps the layer-0 chain of the current step (un-fused layer-1 matmul).
        g1_rec = jnp.dot(h1.astype(jnp.bfloat16), whh1_ref[...],
                         preferred_element_type=jnp.float32)     # (BP, 4H)

        # Layer 0: precomputed, aligned input-gate slab + recurrent matmul.
        g0 = xg0[t * BP:(t + 1) * BP, :] + jnp.dot(
            h0.astype(jnp.bfloat16), whh0_ref[...],
            preferred_element_type=jnp.float32)                  # (BP, 4H)
        h0, c0 = gates(g0, c0)

        # Layer 1: input projection on the fresh h0 + overlapped recurrent term.
        g1 = jnp.dot(h0.astype(jnp.bfloat16), wih1_ref[...],
                     preferred_element_type=jnp.float32) + g1_rec + b1b
        h1, c1 = gates(g1, c1)

    # ---- fc(out[:, -1, :]) as a VPU multiply + lane reduction (N=1 MXU push avoided);
    # only the real (unpadded) batch rows are stored.
    y = jnp.sum(h1 * wfc_ref[...], axis=-1, keepdims=True) + bfc_ref[...]   # (BP, 1)
    out_ref[...] = y[:B, :]


def lstm_forward(x, prepped):
    """x: (B, T, I) batch-first, like the PyTorch module. Returns (B, 1) float32.

    `prepped` must come from prepare_params() (weights already reordered / bf16-cast),
    so the only per-call host-side work is the x transpose / pad / cast.
    """
    B, T, I = x.shape
    BP = ((B + 7) // 8) * 8   # pad batch to a sublane multiple for aligned slices

    x_tm = jnp.transpose(x, (1, 0, 2))                      # (T, B, I) time-major
    if BP != B:
        x_tm = jnp.pad(x_tm, ((0, 0), (0, BP - B), (0, 0)))
    x2 = x_tm.reshape(T * BP, I).astype(jnp.bfloat16)       # (T*BP, I)

    kernel = pl.pallas_call(
        functools.partial(lstm_kernel, seq_len=T, batch=B, batch_padded=BP),
        out_shape=jax.ShapeDtypeStruct((B, OUTPUT), jnp.float32),
        in_specs=[pl.BlockSpec(memory_space=pltpu.MemorySpace.VMEM)] * 9,
        out_specs=pl.BlockSpec(memory_space=pltpu.MemorySpace.VMEM),
    )
    return kernel(x2, prepped["wih0"], prepped["b0"], prepped["whh0"],
                  prepped["wih1"], prepped["whh1"], prepped["b1"],
                  prepped["wfc"], prepped["bfc"])


def init_params(key):
    """Deterministic init matching PyTorch nn.LSTM / nn.Linear shapes (torch gate order).

    PyTorch stores weight_ih_l{k}: (4H, in), weight_hh_l{k}: (4H, H),
    bias_ih_l{k} + bias_hh_l{k}: (4H,). We pre-transpose recurrent weights to
    (in, 4H) and fuse the two biases into one (1, 4H) row. fc.weight is kept
    as its native (1, H) row; fc.bias as (1, 1). All float32, gate order [i,f,g,o].
    """
    bound = 1.0 / np.sqrt(HIDDEN)
    ks = jax.random.split(key, 10)

    def u(k, shape):
        return jax.random.uniform(k, shape, jnp.float32, -bound, bound)

    wih0 = u(ks[0], (4 * HIDDEN, INPUT_SIZE)).T                     # (I, 4H)
    whh0 = u(ks[1], (4 * HIDDEN, HIDDEN)).T                         # (H, 4H)
    b0 = (u(ks[2], (4 * HIDDEN,)) + u(ks[3], (4 * HIDDEN,)))[None]  # (1, 4H)
    wih1 = u(ks[4], (4 * HIDDEN, HIDDEN)).T                         # (H, 4H)
    whh1 = u(ks[5], (4 * HIDDEN, HIDDEN)).T                         # (H, 4H)
    b1 = (u(ks[6], (4 * HIDDEN,)) + u(ks[7], (4 * HIDDEN,)))[None]  # (1, 4H)
    wfc = jax.random.uniform(ks[8], (OUTPUT, HIDDEN), jnp.float32,
                             -bound, bound)                          # (1, H)
    bfc = jax.random.uniform(ks[9], (OUTPUT,), jnp.float32,
                             -bound, bound)[None, :]                 # (1, 1)
    return {"wih0": wih0, "whh0": whh0, "b0": b0,
            "wih1": wih1, "whh1": whh1, "b1": b1,
            "wfc": wfc, "bfc": bfc}


def _reorder_gates(w):
    """Permute last-dim gate blocks from torch order [i, f, g, o] to kernel order
    [i, f, o, g] (exactly equivalent: each output column's value is unchanged)."""
    H = HIDDEN
    return jnp.concatenate(
        [w[..., :2 * H], w[..., 3 * H:4 * H], w[..., 2 * H:3 * H]], axis=-1)


def prepare_params(raw):
    """One-time weight prep hoisted out of the per-call path: gate-column reorder and
    bf16 casts of all MXU operands (biases / fc stay f32)."""
    return {
        "wih0": _reorder_gates(raw["wih0"]).astype(jnp.bfloat16),   # (I, 4H)
        "whh0": _reorder_gates(raw["whh0"]).astype(jnp.bfloat16),   # (H, 4H)
        "b0":   _reorder_gates(raw["b0"]),                          # (1, 4H) f32
        "wih1": _reorder_gates(raw["wih1"]).astype(jnp.bfloat16),   # (H, 4H)
        "whh1": _reorder_gates(raw["whh1"]).astype(jnp.bfloat16),   # (H, 4H)
        "b1":   _reorder_gates(raw["b1"]),                          # (1, 4H) f32
        "wfc":  raw["wfc"],                                         # (1, H)  f32
        "bfc":  raw["bfc"],                                         # (1, 1)  f32
    }


def reference_forward(x, raw, mirror_kernel_precision=False):
    """Pure-JAX reference in torch gate order. If mirror_kernel_precision, the same
    bf16 rounding the kernel applies (x, matmul weights, and the hidden-state inputs
    to each dot) is applied here too, so the tight comparison is apples-to-apples."""
    H = HIDDEN

    if mirror_kernel_precision:
        def q(a):
            return a.astype(jnp.bfloat16).astype(jnp.float32)
    else:
        def q(a):
            return a

    wih0, whh0 = raw["wih0"], raw["whh0"]
    wih1, whh1 = raw["wih1"], raw["whh1"]
    b0, b1 = raw["b0"], raw["b1"]
    wfc, bfc = raw["wfc"], raw["bfc"]

    B, T, _ = x.shape
    h0 = c0 = h1 = c1 = jnp.zeros((B, H), jnp.float32)

    def cell(x_t, h, c, wih, whh, b):
        g = q(x_t) @ q(wih) + q(h) @ q(whh) + b
        i = jax.nn.sigmoid(g[:, :H])
        f = jax.nn.sigmoid(g[:, H:2 * H])
        gg = jnp.tanh(g[:, 2 * H:3 * H])
        o = jax.nn.sigmoid(g[:, 3 * H:])
        c = f * c + i * gg
        return o * jnp.tanh(c), c

    for t in range(T):
        h0, c0 = cell(x[:, t, :], h0, c0, wih0, whh0, b0)
        h1, c1 = cell(h0, h1, c1, wih1, whh1, b1)
    return h1 @ wfc.T + bfc


if __name__ == "__main__":
    key = jax.random.PRNGKey(0)
    k_x, k_p = jax.random.split(key)

    B, T = 2, 8
    x = jax.random.normal(k_x, (B, T, INPUT_SIZE), jnp.float32)
    raw = init_params(k_p)
    prepped = prepare_params(raw)

    out = jax.block_until_ready(lstm_forward(x, prepped))
    assert out.shape == (B, OUTPUT), out.shape

    # Tight check vs a reference that mirrors the kernel's bf16 operand rounding.
    ref_mirror = reference_forward(x, raw, mirror_kernel_precision=True)
    np.testing.assert_allclose(np.asarray(out), np.asarray(ref_mirror),
                               rtol=2e-2, atol=2e-2)

    # Looser sanity check vs the pure-f32 reference (difference = bf16 quantization).
    ref_f32 = reference_forward(x, raw, mirror_kernel_precision=False)
    np.testing.assert_allclose(np.asarray(out), np.asarray(ref_f32),
                               rtol=7e-2, atol=7e-2)

    print("KERNEL_OK")
</pallas_src>

<mosaic_0001>
module attributes {stable_mosaic.version = 11 : i64} {
  func.func @lstm_kernel(%arg0: memref<64x6xbf16, #tpu.memory_space<vmem>>, %arg1: memref<6x256xbf16, #tpu.memory_space<vmem>>, %arg2: memref<1x256xf32, #tpu.memory_space<vmem>>, %arg3: memref<64x256xbf16, #tpu.memory_space<vmem>>, %arg4: memref<64x256xbf16, #tpu.memory_space<vmem>>, %arg5: memref<64x256xbf16, #tpu.memory_space<vmem>>, %arg6: memref<1x256xf32, #tpu.memory_space<vmem>>, %arg7: memref<1x64xf32, #tpu.memory_space<vmem>>, %arg8: memref<1x1xf32, #tpu.memory_space<vmem>>, %arg9: memref<2x1xf32, #tpu.memory_space<vmem>>) attributes {dimension_semantics = [], scalar_prefetch = 0 : i64, scratch_operands = 0 : i64, tpu.core_type = #tpu.core_type<tc>} {
    %c0 = arith.constant 0 : index
    %c0_0 = arith.constant 0 : index
    %0 = vector.load %arg0[%c0, %c0_0] : memref<64x6xbf16, #tpu.memory_space<vmem>>, vector<64x6xbf16>
    %c0_1 = arith.constant 0 : index
    %c0_2 = arith.constant 0 : index
    %1 = vector.load %arg1[%c0_1, %c0_2] : memref<6x256xbf16, #tpu.memory_space<vmem>>, vector<6x256xbf16>
    %cst = arith.constant dense<0.000000e+00> : vector<64x256xf32>
    %2 = tpu.matmul %0, %1, %cst {dimension_numbers = #tpu.dot_dimension_numbers<[1], [0], [0], [1], [0, 0, 1, 1], [], []>} : vector<64x6xbf16>, vector<6x256xbf16>, vector<64x256xf32> -> vector<64x256xf32>
    %c0_3 = arith.constant 0 : index
    %c0_4 = arith.constant 0 : index
    %3 = vector.load %arg2[%c0_3, %c0_4] : memref<1x256xf32, #tpu.memory_space<vmem>>, vector<1x256xf32>
    %4 = vector.broadcast %3 : vector<1x256xf32> to vector<64x256xf32>
    %5 = arith.addf %2, %4 : vector<64x256xf32>
    %c0_5 = arith.constant 0 : index
    %c0_6 = arith.constant 0 : index
    %6 = vector.load %arg6[%c0_5, %c0_6] : memref<1x256xf32, #tpu.memory_space<vmem>>, vector<1x256xf32>
    %7 = vector.shape_cast %6 : vector<1x256xf32> to vector<1x256xf32>
    %8 = vector.broadcast %7 : vector<1x256xf32> to vector<8x256xf32>
    %cst_7 = arith.constant 0.000000e+00 : f32
    %9 = vector.broadcast %cst_7 : f32 to vector<8x64xf32>
    %10 = arith.truncf %9 : vector<8x64xf32> to vector<8x64xbf16>
    %c0_8 = arith.constant 0 : index
    %c0_9 = arith.constant 0 : index
    %11 = vector.load %arg5[%c0_8, %c0_9] : memref<64x256xbf16, #tpu.memory_space<vmem>>, vector<64x256xbf16>
    %cst_10 = arith.constant dense<0.000000e+00> : vector<8x256xf32>
    %12 = tpu.matmul %10, %11, %cst_10 {dimension_numbers = #tpu.dot_dimension_numbers<[1], [0], [0], [1], [0, 0, 1, 1], [], []>} : vector<8x64xbf16>, vector<64x256xbf16>, vector<8x256xf32> -> vector<8x256xf32>
    %13 = vector.extract_strided_slice %5 {offsets = [0, 0], sizes = [8, 256], strides = [1, 1]} : vector<64x256xf32> to vector<8x256xf32>
    %14 = arith.truncf %9 : vector<8x64xf32> to vector<8x64xbf16>
    %c0_11 = arith.constant 0 : index
    %c0_12 = arith.constant 0 : index
    %15 = vector.load %arg3[%c0_11, %c0_12] : memref<64x256xbf16, #tpu.memory_space<vmem>>, vector<64x256xbf16>
    %cst_13 = arith.constant dense<0.000000e+00> : vector<8x256xf32>
    %16 = tpu.matmul %14, %15, %cst_13 {dimension_numbers = #tpu.dot_dimension_numbers<[1], [0], [0], [1], [0, 0, 1, 1], [], []>} : vector<8x64xbf16>, vector<64x256xbf16>, vector<8x256xf32> -> vector<8x256xf32>
    %17 = arith.addf %13, %16 : vector<8x256xf32>
    %18 = vector.extract_strided_slice %17 {offsets = [0, 0], sizes = [8, 192], strides = [1, 1]} : vector<8x256xf32> to vector<8x192xf32>
    %cst_14 = arith.constant 5.000000e-01 : f32
    %19 = vector.broadcast %cst_14 : f32 to vector<8x192xf32>
    %20 = arith.mulf %19, %18 : vector<8x192xf32>
    %21 = math.tanh %20 : vector<8x192xf32>
    %cst_15 = arith.constant 5.000000e-01 : f32
    %22 = vector.broadcast %cst_15 : f32 to vector<8x192xf32>
    %23 = arith.mulf %22, %21 : vector<8x192xf32>
    %cst_16 = arith.constant 5.000000e-01 : f32
    %24 = vector.broadcast %cst_16 : f32 to vector<8x192xf32>
    %25 = arith.addf %23, %24 : vector<8x192xf32>
    %26 = vector.extract_strided_slice %25 {offsets = [0, 0], sizes = [8, 64], strides = [1, 1]} : vector<8x192xf32> to vector<8x64xf32>
    %27 = vector.extract_strided_slice %25 {offsets = [0, 64], sizes = [8, 64], strides = [1, 1]} : vector<8x192xf32> to vector<8x64xf32>
    %28 = vector.extract_strided_slice %25 {offsets = [0, 128], sizes = [8, 64], strides = [1, 1]} : vector<8x192xf32> to vector<8x64xf32>
    %29 = vector.extract_strided_slice %17 {offsets = [0, 192], sizes = [8, 64], strides = [1, 1]} : vector<8x256xf32> to vector<8x64xf32>
    %30 = math.tanh %29 : vector<8x64xf32>
    %31 = arith.mulf %27, %9 : vector<8x64xf32>
    %32 = arith.mulf %26, %30 : vector<8x64xf32>
    %33 = arith.addf %31, %32 : vector<8x64xf32>
    %34 = math.tanh %33 : vector<8x64xf32>
    %35 = arith.mulf %28, %34 : vector<8x64xf32>
    %36 = arith.truncf %35 : vector<8x64xf32> to vector<8x64xbf16>
    %c0_17 = arith.constant 0 : index
    %c0_18 = arith.constant 0 : index
    %37 = vector.load %arg4[%c0_17, %c0_18] : memref<64x256xbf16, #tpu.memory_space<vmem>>, vector<64x256xbf16>
    %cst_19 = arith.constant dense<0.000000e+00> : vector<8x256xf32>
    %38 = tpu.matmul %36, %37, %cst_19 {dimension_numbers = #tpu.dot_dimension_numbers<[1], [0], [0], [1], [0, 0, 1, 1], [], []>} : vector<8x64xbf16>, vector<64x256xbf16>, vector<8x256xf32> -> vector<8x256xf32>
    %39 = arith.addf %38, %12 : vector<8x256xf32>
    %40 = arith.addf %39, %8 : vector<8x256xf32>
    %41 = vector.extract_strided_slice %40 {offsets = [0, 0], sizes = [8, 192], strides = [1, 1]} : vector<8x256xf32> to vector<8x192xf32>
    %cst_20 = arith.constant 5.000000e-01 : f32
    %42 = vector.broadcast %cst_20 : f32 to vector<8x192xf32>
    %43 = arith.mulf %42, %41 : vector<8x192xf32>
    %44 = math.tanh %43 : vector<8x192xf32>
    %cst_21 = arith.constant 5.000000e-01 : f32
    %45 = vector.broadcast %cst_21 : f32 to vector<8x192xf32>
    %46 = arith.mulf %45, %44 : vector<8x192xf32>
    %cst_22 = arith.constant 5.000000e-01 : f32
    %47 = vector.broadcast %cst_22 : f32 to vector<8x192xf32>
    %48 = arith.addf %46, %47 : vector<8x192xf32>
    %49 = vector.extract_strided_slice %48 {offsets = [0, 0], sizes = [8, 64], strides = [1, 1]} : vector<8x192xf32> to vector<8x64xf32>
    %50 = vector.extract_strided_slice %48 {offsets = [0, 64], sizes = [8, 64], strides = [1, 1]} : vector<8x192xf32> to vector<8x64xf32>
    %51 = vector.extract_strided_slice %48 {offsets = [0, 128], sizes = [8, 64], strides = [1, 1]} : vector<8x192xf32> to vector<8x64xf32>
    %52 = vector.extract_strided_slice %40 {offsets = [0, 192], sizes = [8, 64], strides = [1, 1]} : vector<8x256xf32> to vector<8x64xf32>
    %53 = math.tanh %52 : vector<8x64xf32>
    %54 = arith.mulf %50, %9 : vector<8x64xf32>
    %55 = arith.mulf %49, %53 : vector<8x64xf32>
    %56 = arith.addf %54, %55 : vector<8x64xf32>
    %57 = math.tanh %56 : vector<8x64xf32>
    %58 = arith.mulf %51, %57 : vector<8x64xf32>
    %59 = arith.truncf %58 : vector<8x64xf32> to vector<8x64xbf16>
    %c0_23 = arith.constant 0 : index
    %c0_24 = arith.constant 0 : index
    %60 = vector.load %arg5[%c0_23, %c0_24] : memref<64x256xbf16, #tpu.memory_space<vmem>>, vector<64x256xbf16>
    %cst_25 = arith.constant dense<0.000000e+00> : vector<8x256xf32>
    %61 = tpu.matmul %59, %60, %cst_25 {dimension_numbers = #tpu.dot_dimension_numbers<[1], [0], [0], [1], [0, 0, 1, 1], [], []>} : vector<8x64xbf16>, vector<64x256xbf16>, vector<8x256xf32> -> vector<8x256xf32>
    %62 = vector.extract_strided_slice %5 {offsets = [8, 0], sizes = [8, 256], strides = [1, 1]} : vector<64x256xf32> to vector<8x256xf32>
    %63 = arith.truncf %35 : vector<8x64xf32> to vector<8x64xbf16>
    %c0_26 = arith.constant 0 : index
    %c0_27 = arith.constant 0 : index
    %64 = vector.load %arg3[%c0_26, %c0_27] : memref<64x256xbf16, #tpu.memory_space<vmem>>, vector<64x256xbf16>
    %cst_28 = arith.constant dense<0.000000e+00> : vector<8x256xf32>
    %65 = tpu.matmul %63, %64, %cst_28 {dimension_numbers = #tpu.dot_dimension_numbers<[1], [0], [0], [1], [0, 0, 1, 1], [], []>} : vector<8x64xbf16>, vector<64x256xbf16>, vector<8x256xf32> -> vector<8x256xf32>
    %66 = arith.addf %62, %65 : vector<8x256xf32>
    %67 = vector.extract_strided_slice %66 {offsets = [0, 0], sizes = [8, 192], strides = [1, 1]} : vector<8x256xf32> to vector<8x192xf32>
    %cst_29 = arith.constant 5.000000e-01 : f32
    %68 = vector.broadcast %cst_29 : f32 to vector<8x192xf32>
    %69 = arith.mulf %68, %67 : vector<8x192xf32>
    %70 = math.tanh %69 : vector<8x192xf32>
    %cst_30 = arith.constant 5.000000e-01 : f32
    %71 = vector.broadcast %cst_30 : f32 to vector<8x192xf32>
    %72 = arith.mulf %71, %70 : vector<8x192xf32>
    %cst_31 = arith.constant 5.000000e-01 : f32
    %73 = vector.broadcast %cst_31 : f32 to vector<8x192xf32>
    %74 = arith.addf %72, %73 : vector<8x192xf32>
    %75 = vector.extract_strided_slice %74 {offsets = [0, 0], sizes = [8, 64], strides = [1, 1]} : vector<8x192xf32> to vector<8x64xf32>
    %76 = vector.extract_strided_slice %74 {offsets = [0, 64], sizes = [8, 64], strides = [1, 1]} : vector<8x192xf32> to vector<8x64xf32>
    %77 = vector.extract_strided_slice %74 {offsets = [0, 128], sizes = [8, 64], strides = [1, 1]} : vector<8x192xf32> to vector<8x64xf32>
    %78 = vector.extract_strided_slice %66 {offsets = [0, 192], sizes = [8, 64], strides = [1, 1]} : vector<8x256xf32> to vector<8x64xf32>
    %79 = math.tanh %78 : vector<8x64xf32>
    %80 = arith.mulf %76, %33 : vector<8x64xf32>
    %81 = arith.mulf %75, %79 : vector<8x64xf32>
    %82 = arith.addf %80, %81 : vector<8x64xf32>
    %83 = math.tanh %82 : vector<8x64xf32>
    %84 = arith.mulf %77, %83 : vector<8x64xf32>
    %85 = arith.truncf %84 : vector<8x64xf32> to vector<8x64xbf16>
    %c0_32 = arith.constant 0 : index
    %c0_33 = arith.constant 0 : index
    %86 = vector.load %arg4[%c0_32, %c0_33] : memref<64x256xbf16, #tpu.memory_space<vmem>>, vector<64x256xbf16>
    %cst_34 = arith.constant dense<0.000000e+00> : vector<8x256xf32>
    %87 = tpu.matmul %85, %86, %cst_34 {dimension_numbers = #tpu.dot_dimension_numbers<[1], [0], [0], [1], [0, 0, 1, 1], [], []>} : vector<8x64xbf16>, vector<64x256xbf16>, vector<8x256xf32> -> vector<8x256xf32>
    %88 = arith.addf %87, %61 : vector<8x256xf32>
    %89 = arith.addf %88, %8 : vector<8x256xf32>
    %90 = vector.extract_strided_slice %89 {offsets = [0, 0], sizes = [8, 192], strides = [1, 1]} : vector<8x256xf32> to vector<8x192xf32>
    %cst_35 = arith.constant 5.000000e-01 : f32
    %91 = vector.broadcast %cst_35 : f32 to vector<8x192xf32>
    %92 = arith.mulf %91, %90 : vector<8x192xf32>
    %93 = math.tanh %92 : vector<8x192xf32>
    %cst_36 = arith.constant 5.000000e-01 : f32
    %94 = vector.broadcast %cst_36 : f32 to vector<8x192xf32>
    %95 = arith.mulf %94, %93 : vector<8x192xf32>
    %cst_37 = arith.constant 5.000000e-01 : f32
    %96 = vector.broadcast %cst_37 : f32 to vector<8x192xf32>
    %97 = arith.addf %95, %96 : vector<8x192xf32>
    %98 = vector.extract_strided_slice %97 {offsets = [0, 0], sizes = [8, 64], strides = [1, 1]} : vector<8x192xf32> to vector<8x64xf32>
    %99 = vector.extract_strided_slice %97 {offsets = [0, 64], sizes = [8, 64], strides = [1, 1]} : vector<8x192xf32> to vector<8x64xf32>
    %100 = vector.extract_strided_slice %97 {offsets = [0, 128], sizes = [8, 64], strides = [1, 1]} : vector<8x192xf32> to vector<8x64xf32>
    %101 = vector.extract_strided_slice %89 {offsets = [0, 192], sizes = [8, 64], strides = [1, 1]} : vector<8x256xf32> to vector<8x64xf32>
    %102 = math.tanh %101 : vector<8x64xf32>
    %103 = arith.mulf %99, %56 : vector<8x64xf32>
    %104 = arith.mulf %98, %102 : vector<8x64xf32>
    %105 = arith.addf %103, %104 : vector<8x64xf32>
    %106 = math.tanh %105 : vector<8x64xf32>
    %107 = arith.mulf %100, %106 : vector<8x64xf32>
    %108 = arith.truncf %107 : vector<8x64xf32> to vector<8x64xbf16>
    %c0_38 = arith.constant 0 : index
    %c0_39 = arith.constant 0 : index
    %109 = vector.load %arg5[%c0_38, %c0_39] : memref<64x256xbf16, #tpu.memory_space<vmem>>, vector<64x256xbf16>
    %cst_40 = arith.constant dense<0.000000e+00> : vector<8x256xf32>
    %110 = tpu.matmul %108, %109, %cst_40 {dimension_numbers = #tpu.dot_dimension_numbers<[1], [0], [0], [1], [0, 0, 1, 1], [], []>} : vector<8x64xbf16>, vector<64x256xbf16>, vector<8x256xf32> -> vector<8x256xf32>
    %111 = vector.extract_strided_slice %5 {offsets = [16, 0], sizes = [8, 256], strides = [1, 1]} : vector<64x256xf32> to vector<8x256xf32>
    %112 = arith.truncf %84 : vector<8x64xf32> to vector<8x64xbf16>
    %c0_41 = arith.constant 0 : index
    %c0_42 = arith.constant 0 : index
    %113 = vector.load %arg3[%c0_41, %c0_42] : memref<64x256xbf16, #tpu.memory_space<vmem>>, vector<64x256xbf16>
    %cst_43 = arith.constant dense<0.000000e+00> : vector<8x256xf32>
    %114 = tpu.matmul %112, %113, %cst_43 {dimension_numbers = #tpu.dot_dimension_numbers<[1], [0], [0], [1], [0, 0, 1, 1], [], []>} : vector<8x64xbf16>, vector<64x256xbf16>, vector<8x256xf32> -> vector<8x256xf32>
    %115 = arith.addf %111, %114 : vector<8x256xf32>
    %116 = vector.extract_strided_slice %115 {offsets = [0, 0], sizes = [8, 192], strides = [1, 1]} : vector<8x256xf32> to vector<8x192xf32>
    %cst_44 = arith.constant 5.000000e-01 : f32
    %117 = vector.broadcast %cst_44 : f32 to vector<8x192xf32>
    %118 = arith.mulf %117, %116 : vector<8x192xf32>
    %119 = math.tanh %118 : vector<8x192xf32>
    %cst_45 = arith.constant 5.000000e-01 : f32
    %120 = vector.broadcast %cst_45 : f32 to vector<8x192xf32>
    %121 = arith.mulf %120, %119 : vector<8x192xf32>
    %cst_46 = arith.constant 5.000000e-01 : f32
    %122 = vector.broadcast %cst_46 : f32 to vector<8x192xf32>
    %123 = arith.addf %121, %122 : vector<8x192xf32>
    %124 = vector.extract_strided_slice %123 {offsets = [0, 0], sizes = [8, 64], strides = [1, 1]} : vector<8x192xf32> to vector<8x64xf32>
    %125 = vector.extract_strided_slice %123 {offsets = [0, 64], sizes = [8, 64], strides = [1, 1]} : vector<8x192xf32> to vector<8x64xf32>
    %126 = vector.extract_strided_slice %123 {offsets = [0, 128], sizes = [8, 64], strides = [1, 1]} : vector<8x192xf32> to vector<8x64xf32>
    %127 = vector.extract_strided_slice %115 {offsets = [0, 192], sizes = [8, 64], strides = [1, 1]} : vector<8x256xf32> to vector<8x64xf32>
    %128 = math.tanh %127 : vector<8x64xf32>
    %129 = arith.mulf %125, %82 : vector<8x64xf32>
    %130 = arith.mulf %124, %128 : vector<8x64xf32>
    %131 = arith.addf %129, %130 : vector<8x64xf32>
    %132 = math.tanh %131 : vector<8x64xf32>
    %133 = arith.mulf %126, %132 : vector<8x64xf32>
    %134 = arith.truncf %133 : vector<8x64xf32> to vector<8x64xbf16>
    %c0_47 = arith.constant 0 : index
    %c0_48 = arith.constant 0 : index
    %135 = vector.load %arg4[%c0_47, %c0_48] : memref<64x256xbf16, #tpu.memory_space<vmem>>, vector<64x256xbf16>
    %cst_49 = arith.constant dense<0.000000e+00> : vector<8x256xf32>
    %136 = tpu.matmul %134, %135, %cst_49 {dimension_numbers = #tpu.dot_dimension_numbers<[1], [0], [0], [1], [0, 0, 1, 1], [], []>} : vector<8x64xbf16>, vector<64x256xbf16>, vector<8x256xf32> -> vector<8x256xf32>
    %137 = arith.addf %136, %110 : vector<8x256xf32>
    %138 = arith.addf %137, %8 : vector<8x256xf32>
    %139 = vector.extract_strided_slice %138 {offsets = [0, 0], sizes = [8, 192], strides = [1, 1]} : vector<8x256xf32> to vector<8x192xf32>
    %cst_50 = arith.constant 5.000000e-01 : f32
    %140 = vector.broadcast %cst_50 : f32 to vector<8x192xf32>
    %141 = arith.mulf %140, %139 : vector<8x192xf32>
    %142 = math.tanh %141 : vector<8x192xf32>
    %cst_51 = arith.constant 5.000000e-01 : f32
    %143 = vector.broadcast %cst_51 : f32 to vector<8x192xf32>
    %144 = arith.mulf %143, %142 : vector<8x192xf32>
    %cst_52 = arith.constant 5.000000e-01 : f32
    %145 = vector.broadcast %cst_52 : f32 to vector<8x192xf32>
    %146 = arith.addf %144, %145 : vector<8x192xf32>
    %147 = vector.extract_strided_slice %146 {offsets = [0, 0], sizes = [8, 64], strides = [1, 1]} : vector<8x192xf32> to vector<8x64xf32>
    %148 = vector.extract_strided_slice %146 {offsets = [0, 64], sizes = [8, 64], strides = [1, 1]} : vector<8x192xf32> to vector<8x64xf32>
    %149 = vector.extract_strided_slice %146 {offsets = [0, 128], sizes = [8, 64], strides = [1, 1]} : vector<8x192xf32> to vector<8x64xf32>
    %150 = vector.extract_strided_slice %138 {offsets = [0, 192], sizes = [8, 64], strides = [1, 1]} : vector<8x256xf32> to vector<8x64xf32>
    %151 = math.tanh %150 : vector<8x64xf32>
    %152 = arith.mulf %148, %105 : vector<8x64xf32>
    %153 = arith.mulf %147, %151 : vector<8x64xf32>
    %154 = arith.addf %152, %153 : vector<8x64xf32>
    %155 = math.tanh %154 : vector<8x64xf32>
    %156 = arith.mulf %149, %155 : vector<8x64xf32>
    %157 = arith.truncf %156 : vector<8x64xf32> to vector<8x64xbf16>
    %c0_53 = arith.constant 0 : index
    %c0_54 = arith.constant 0 : index
    %158 = vector.load %arg5[%c0_53, %c0_54] : memref<64x256xbf16, #tpu.memory_space<vmem>>, vector<64x256xbf16>
    %cst_55 = arith.constant dense<0.000000e+00> : vector<8x256xf32>
    %159 = tpu.matmul %157, %158, %cst_55 {dimension_numbers = #tpu.dot_dimension_numbers<[1], [0], [0], [1], [0, 0, 1, 1], [], []>} : vector<8x64xbf16>, vector<64x256xbf16>, vector<8x256xf32> -> vector<8x256xf32>
    %160 = vector.extract_strided_slice %5 {offsets = [24, 0], sizes = [8, 256], strides = [1, 1]} : vector<64x256xf32> to vector<8x256xf32>
    %161 = arith.truncf %133 : vector<8x64xf32> to vector<8x64xbf16>
    %c0_56 = arith.constant 0 : index
    %c0_57 = arith.constant 0 : index
    %162 = vector.load %arg3[%c0_56, %c0_57] : memref<64x256xbf16, #tpu.memory_space<vmem>>, vector<64x256xbf16>
    %cst_58 = arith.constant dense<0.000000e+00> : vector<8x256xf32>
    %163 = tpu.matmul %161, %162, %cst_58 {dimension_numbers = #tpu.dot_dimension_numbers<[1], [0], [0], [1], [0, 0, 1, 1], [], []>} : vector<8x64xbf16>, vector<64x256xbf16>, vector<8x256xf32> -> vector<8x256xf32>
    %164 = arith.addf %160, %163 : vector<8x256xf32>
    %165 = vector.extract_strided_slice %164 {offsets = [0, 0], sizes = [8, 192], strides = [1, 1]} : vector<8x256xf32> to vector<8x192xf32>
    %cst_59 = arith.constant 5.000000e-01 : f32
    %166 = vector.broadcast %cst_59 : f32 to vector<8x192xf32>
    %167 = arith.mulf %166, %165 : vector<8x192xf32>
    %168 = math.tanh %167 : vector<8x192xf32>
    %cst_60 = arith.constant 5.000000e-01 : f32
    %169 = vector.broadcast %cst_60 : f32 to vector<8x192xf32>
    %170 = arith.mulf %169, %168 : vector<8x192xf32>
    %cst_61 = arith.constant 5.000000e-01 : f32
    %171 = vector.broadcast %cst_61 : f32 to vector<8x192xf32>
    %172 = arith.addf %170, %171 : vector<8x192xf32>
    %173 = vector.extract_strided_slice %172 {offsets = [0, 0], sizes = [8, 64], strides = [1, 1]} : vector<8x192xf32> to vector<8x64xf32>
    %174 = vector.extract_strided_slice %172 {offsets = [0, 64], sizes = [8, 64], strides = [1, 1]} : vector<8x192xf32> to vector<8x64xf32>
    %175 = vector.extract_strided_slice %172 {offsets = [0, 128], sizes = [8, 64], strides = [1, 1]} : vector<8x192xf32> to vector<8x64xf32>
    %176 = vector.extract_strided_slice %164 {offsets = [0, 192], sizes = [8, 64], strides = [1, 1]} : vector<8x256xf32> to vector<8x64xf32>
    %177 = math.tanh %176 : vector<8x64xf32>
    %178 = arith.mulf %174, %131 : vector<8x64xf32>
    %179 = arith.mulf %173, %177 : vector<8x64xf32>
    %180 = arith.addf %178, %179 : vector<8x64xf32>
    %181 = math.tanh %180 : vector<8x64xf32>
    %182 = arith.mulf %175, %181 : vector<8x64xf32>
    %183 = arith.truncf %182 : vector<8x64xf32> to vector<8x64xbf16>
    %c0_62 = arith.constant 0 : index
    %c0_63 = arith.constant 0 : index
    %184 = vector.load %arg4[%c0_62, %c0_63] : memref<64x256xbf16, #tpu.memory_space<vmem>>, vector<64x256xbf16>
    %cst_64 = arith.constant dense<0.000000e+00> : vector<8x256xf32>
    %185 = tpu.matmul %183, %184, %cst_64 {dimension_numbers = #tpu.dot_dimension_numbers<[1], [0], [0], [1], [0, 0, 1, 1], [], []>} : vector<8x64xbf16>, vector<64x256xbf16>, vector<8x256xf32> -> vector<8x256xf32>
    %186 = arith.addf %185, %159 : vector<8x256xf32>
    %187 = arith.addf %186, %8 : vector<8x256xf32>
    %188 = vector.extract_strided_slice %187 {offsets = [0, 0], sizes = [8, 192], strides = [1, 1]} : vector<8x256xf32> to vector<8x192xf32>
    %cst_65 = arith.constant 5.000000e-01 : f32
    %189 = vector.broadcast %cst_65 : f32 to vector<8x192xf32>
    %190 = arith.mulf %189, %188 : vector<8x192xf32>
    %191 = math.tanh %190 : vector<8x192xf32>
    %cst_66 = arith.constant 5.000000e-01 : f32
    %192 = vector.broadcast %cst_66 : f32 to vector<8x192xf32>
    %193 = arith.mulf %192, %191 : vector<8x192xf32>
    %cst_67 = arith.constant 5.000000e-01 : f32
    %194 = vector.broadcast %cst_67 : f32 to vector<8x192xf32>
    %195 = arith.addf %193, %194 : vector<8x192xf32>
    %196 = vector.extract_strided_slice %195 {offsets = [0, 0], sizes = [8, 64], strides = [1, 1]} : vector<8x192xf32> to vector<8x64xf32>
    %197 = vector.extract_strided_slice %195 {offsets = [0, 64], sizes = [8, 64], strides = [1, 1]} : vector<8x192xf32> to vector<8x64xf32>
    %198 = vector.extract_strided_slice %195 {offsets = [0, 128], sizes = [8, 64], strides = [1, 1]} : vector<8x192xf32> to vector<8x64xf32>
    %199 = vector.extract_strided_slice %187 {offsets = [0, 192], sizes = [8, 64], strides = [1, 1]} : vector<8x256xf32> to vector<8x64xf32>
    %200 = math.tanh %199 : vector<8x64xf32>
    %201 = arith.mulf %197, %154 : vector<8x64xf32>
    %202 = arith.mulf %196, %200 : vector<8x64xf32>
    %203 = arith.addf %201, %202 : vector<8x64xf32>
    %204 = math.tanh %203 : vector<8x64xf32>
    %205 = arith.mulf %198, %204 : vector<8x64xf32>
    %206 = arith.truncf %205 : vector<8x64xf32> to vector<8x64xbf16>
    %c0_68 = arith.constant 0 : index
    %c0_69 = arith.constant 0 : index
    %207 = vector.load %arg5[%c0_68, %c0_69] : memref<64x256xbf16, #tpu.memory_space<vmem>>, vector<64x256xbf16>
    %cst_70 = arith.constant dense<0.000000e+00> : vector<8x256xf32>
    %208 = tpu.matmul %206, %207, %cst_70 {dimension_numbers = #tpu.dot_dimension_numbers<[1], [0], [0], [1], [0, 0, 1, 1], [], []>} : vector<8x64xbf16>, vector<64x256xbf16>, vector<8x256xf32> -> vector<8x256xf32>
    %209 = vector.extract_strided_slice %5 {offsets = [32, 0], sizes = [8, 256], strides = [1, 1]} : vector<64x256xf32> to vector<8x256xf32>
    %210 = arith.truncf %182 : vector<8x64xf32> to vector<8x64xbf16>
    %c0_71 = arith.constant 0 : index
    %c0_72 = arith.constant 0 : index
    %211 = vector.load %arg3[%c0_71, %c0_72] : memref<64x256xbf16, #tpu.memory_space<vmem>>, vector<64x256xbf16>
    %cst_73 = arith.constant dense<0.000000e+00> : vector<8x256xf32>
    %212 = tpu.matmul %210, %211, %cst_73 {dimension_numbers = #tpu.dot_dimension_numbers<[1], [0], [0], [1], [0, 0, 1, 1], [], []>} : vector<8x64xbf16>, vector<64x256xbf16>, vector<8x256xf32> -> vector<8x256xf32>
    %213 = arith.addf %209, %212 : vector<8x256xf32>
    %214 = vector.extract_strided_slice %213 {offsets = [0, 0], sizes = [8, 192], strides = [1, 1]} : vector<8x256xf32> to vector<8x192xf32>
    %cst_74 = arith.constant 5.000000e-01 : f32
    %215 = vector.broadcast %cst_74 : f32 to vector<8x192xf32>
    %216 = arith.mulf %215, %214 : vector<8x192xf32>
    %217 = math.tanh %216 : vector<8x192xf32>
    %cst_75 = arith.constant 5.000000e-01 : f32
    %218 = vector.broadcast %cst_75 : f32 to vector<8x192xf32>
    %219 = arith.mulf %218, %217 : vector<8x192xf32>
    %cst_76 = arith.constant 5.000000e-01 : f32
    %220 = vector.broadcast %cst_76 : f32 to vector<8x192xf32>
    %221 = arith.addf %219, %220 : vector<8x192xf32>
    %222 = vector.extract_strided_slice %221 {offsets = [0, 0], sizes = [8, 64], strides = [1, 1]} : vector<8x192xf32> to vector<8x64xf32>
    %223 = vector.extract_strided_slice %221 {offsets = [0, 64], sizes = [8, 64], strides = [1, 1]} : vector<8x192xf32> to vector<8x64xf32>
    %224 = vector.extract_strided_slice %221 {offsets = [0, 128], sizes = [8, 64], strides = [1, 1]} : vector<8x192xf32> to vector<8x64xf32>
    %225 = vector.extract_strided_slice %213 {offsets = [0, 192], sizes = [8, 64], strides = [1, 1]} : vector<8x256xf32> to vector<8x64xf32>
    %226 = math.tanh %225 : vector<8x64xf32>
    %227 = arith.mulf %223, %180 : vector<8x64xf32>
    %228 = arith.mulf %222, %226 : vector<8x64xf32>
    %229 = arith.addf %227, %228 : vector<8x64xf32>
    %230 = math.tanh %229 : vector<8x64xf32>
    %231 = arith.mulf %224, %230 : vector<8x64xf32>
    %232 = arith.truncf %231 : vector<8x64xf32> to vector<8x64xbf16>
    %c0_77 = arith.constant 0 : index
    %c0_78 = arith.constant 0 : index
    %233 = vector.load %arg4[%c0_77, %c0_78] : memref<64x256xbf16, #tpu.memory_space<vmem>>, vector<64x256xbf16>
    %cst_79 = arith.constant dense<0.000000e+00> : vector<8x256xf32>
    %234 = tpu.matmul %232, %233, %cst_79 {dimension_numbers = #tpu.dot_dimension_numbers<[1], [0], [0], [1], [0, 0, 1, 1], [], []>} : vector<8x64xbf16>, vector<64x256xbf16>, vector<8x256xf32> -> vector<8x256xf32>
    %235 = arith.addf %234, %208 : vector<8x256xf32>
    %236 = arith.addf %235, %8 : vector<8x256xf32>
    %237 = vector.extract_strided_slice %236 {offsets = [0, 0], sizes = [8, 192], strides = [1, 1]} : vector<8x256xf32> to vector<8x192xf32>
    %cst_80 = arith.constant 5.000000e-01 : f32
    %238 = vector.broadcast %cst_80 : f32 to vector<8x192xf32>
    %239 = arith.mulf %238, %237 : vector<8x192xf32>
    %240 = math.tanh %239 : vector<8x192xf32>
    %cst_81 = arith.constant 5.000000e-01 : f32
    %241 = vector.broadcast %cst_81 : f32 to vector<8x192xf32>
    %242 = arith.mulf %241, %240 : vector<8x192xf32>
    %cst_82 = arith.constant 5.000000e-01 : f32
    %243 = vector.broadcast %cst_82 : f32 to vector<8x192xf32>
    %244 = arith.addf %242, %243 : vector<8x192xf32>
    %245 = vector.extract_strided_slice %244 {offsets = [0, 0], sizes = [8, 64], strides = [1, 1]} : vector<8x192xf32> to vector<8x64xf32>
    %246 = vector.extract_strided_slice %244 {offsets = [0, 64], sizes = [8, 64], strides = [1, 1]} : vector<8x192xf32> to vector<8x64xf32>
    %247 = vector.extract_strided_slice %244 {offsets = [0, 128], sizes = [8, 64], strides = [1, 1]} : vector<8x192xf32> to vector<8x64xf32>
    %248 = vector.extract_strided_slice %236 {offsets = [0, 192], sizes = [8, 64], strides = [1, 1]} : vector<8x256xf32> to vector<8x64xf32>
    %249 = math.tanh %248 : vector<8x64xf32>
    %250 = arith.mulf %246, %203 : vector<8x64xf32>
    %251 = arith.mulf %245, %249 : vector<8x64xf32>
    %252 = arith.addf %250, %251 : vector<8x64xf32>
    %253 = math.tanh %252 : vector<8x64xf32>
    %254 = arith.mulf %247, %253 : vector<8x64xf32>
    %255 = arith.truncf %254 : vector<8x64xf32> to vector<8x64xbf16>
    %c0_83 = arith.constant 0 : index
    %c0_84 = arith.constant 0 : index
    %256 = vector.load %arg5[%c0_83, %c0_84] : memref<64x256xbf16, #tpu.memory_space<vmem>>, vector<64x256xbf16>
    %cst_85 = arith.constant dense<0.000000e+00> : vector<8x256xf32>
    %257 = tpu.matmul %255, %256, %cst_85 {dimension_numbers = #tpu.dot_dimension_numbers<[1], [0], [0], [1], [0, 0, 1, 1], [], []>} : vector<8x64xbf16>, vector<64x256xbf16>, vector<8x256xf32> -> vector<8x256xf32>
    %258 = vector.extract_strided_slice %5 {offsets = [40, 0], sizes = [8, 256], strides = [1, 1]} : vector<64x256xf32> to vector<8x256xf32>
    %259 = arith.truncf %231 : vector<8x64xf32> to vector<8x64xbf16>
    %c0_86 = arith.constant 0 : index
    %c0_87 = arith.constant 0 : index
    %260 = vector.load %arg3[%c0_86, %c0_87] : memref<64x256xbf16, #tpu.memory_space<vmem>>, vector<64x256xbf16>
    %cst_88 = arith.constant dense<0.000000e+00> : vector<8x256xf32>
    %261 = tpu.matmul %259, %260, %cst_88 {dimension_numbers = #tpu.dot_dimension_numbers<[1], [0], [0], [1], [0, 0, 1, 1], [], []>} : vector<8x64xbf16>, vector<64x256xbf16>, vector<8x256xf32> -> vector<8x256xf32>
    %262 = arith.addf %258, %261 : vector<8x256xf32>
    %263 = vector.extract_strided_slice %262 {offsets = [0, 0], sizes = [8, 192], strides = [1, 1]} : vector<8x256xf32> to vector<8x192xf32>
    %cst_89 = arith.constant 5.000000e-01 : f32
    %264 = vector.broadcast %cst_89 : f32 to vector<8x192xf32>
    %265 = arith.mulf %264, %263 : vector<8x192xf32>
    %266 = math.tanh %265 : vector<8x192xf32>
    %cst_90 = arith.constant 5.000000e-01 : f32
    %267 = vector.broadcast %cst_90 : f32 to vector<8x192xf32>
    %268 = arith.mulf %267, %266 : vector<8x192xf32>
    %cst_91 = arith.constant 5.000000e-01 : f32
    %269 = vector.broadcast %cst_91 : f32 to vector<8x192xf32>
    %270 = arith.addf %268, %269 : vector<8x192xf32>
    %271 = vector.extract_strided_slice %270 {offsets = [0, 0], sizes = [8, 64], strides = [1, 1]} : vector<8x192xf32> to vector<8x64xf32>
    %272 = vector.extract_strided_slice %270 {offsets = [0, 64], sizes = [8, 64], strides = [1, 1]} : vector<8x192xf32> to vector<8x64xf32>
    %273 = vector.extract_strided_slice %270 {offsets = [0, 128], sizes = [8, 64], strides = [1, 1]} : vector<8x192xf32> to vector<8x64xf32>
    %274 = vector.extract_strided_slice %262 {offsets = [0, 192], sizes = [8, 64], strides = [1, 1]} : vector<8x256xf32> to vector<8x64xf32>
    %275 = math.tanh %274 : vector<8x64xf32>
    %276 = arith.mulf %272, %229 : vector<8x64xf32>
    %277 = arith.mulf %271, %275 : vector<8x64xf32>
    %278 = arith.addf %276, %277 : vector<8x64xf32>
    %279 = math.tanh %278 : vector<8x64xf32>
    %280 = arith.mulf %273, %279 : vector<8x64xf32>
    %281 = arith.truncf %280 : vector<8x64xf32> to vector<8x64xbf16>
    %c0_92 = arith.constant 0 : index
    %c0_93 = arith.constant 0 : index
    %282 = vector.load %arg4[%c0_92, %c0_93] : memref<64x256xbf16, #tpu.memory_space<vmem>>, vector<64x256xbf16>
    %cst_94 = arith.constant dense<0.000000e+00> : vector<8x256xf32>
    %283 = tpu.matmul %281, %282, %cst_94 {dimension_numbers = #tpu.dot_dimension_numbers<[1], [0], [0], [1], [0, 0, 1, 1], [], []>} : vector<8x64xbf16>, vector<64x256xbf16>, vector<8x256xf32> -> vector<8x256xf32>
    %284 = arith.addf %283, %257 : vector<8x256xf32>
    %285 = arith.addf %284, %8 : vector<8x256xf32>
    %286 = vector.extract_strided_slice %285 {offsets = [0, 0], sizes = [8, 192], strides = [1, 1]} : vector<8x256xf32> to vector<8x192xf32>
    %cst_95 = arith.constant 5.000000e-01 : f32
    %287 = vector.broadcast %cst_95 : f32 to vector<8x192xf32>
    %288 = arith.mulf %287, %286 : vector<8x192xf32>
    %289 = math.tanh %288 : vector<8x192xf32>
    %cst_96 = arith.constant 5.000000e-01 : f32
    %290 = vector.broadcast %cst_96 : f32 to vector<8x192xf32>
    %291 = arith.mulf %290, %289 : vector<8x192xf32>
    %cst_97 = arith.constant 5.000000e-01 : f32
    %292 = vector.broadcast %cst_97 : f32 to vector<8x192xf32>
    %293 = arith.addf %291, %292 : vector<8x192xf32>
    %294 = vector.extract_strided_slice %293 {offsets = [0, 0], sizes = [8, 64], strides = [1, 1]} : vector<8x192xf32> to vector<8x64xf32>
    %295 = vector.extract_strided_slice %293 {offsets = [0, 64], sizes = [8, 64], strides = [1, 1]} : vector<8x192xf32> to vector<8x64xf32>
    %296 = vector.extract_strided_slice %293 {offsets = [0, 128], sizes = [8, 64], strides = [1, 1]} : vector<8x192xf32> to vector<8x64xf32>
    %297 = vector.extract_strided_slice %285 {offsets = [0, 192], sizes = [8, 64], strides = [1, 1]} : vector<8x256xf32> to vector<8x64xf32>
    %298 = math.tanh %297 : vector<8x64xf32>
    %299 = arith.mulf %295, %252 : vector<8x64xf32>
    %300 = arith.mulf %294, %298 : vector<8x64xf32>
    %301 = arith.addf %299, %300 : vector<8x64xf32>
    %302 = math.tanh %301 : vector<8x64xf32>
    %303 = arith.mulf %296, %302 : vector<8x64xf32>
    %304 = arith.truncf %303 : vector<8x64xf32> to vector<8x64xbf16>
    %c0_98 = arith.constant 0 : index
    %c0_99 = arith.constant 0 : index
    %305 = vector.load %arg5[%c0_98, %c0_99] : memref<64x256xbf16, #tpu.memory_space<vmem>>, vector<64x256xbf16>
    %cst_100 = arith.constant dense<0.000000e+00> : vector<8x256xf32>
    %306 = tpu.matmul %304, %305, %cst_100 {dimension_numbers = #tpu.dot_dimension_numbers<[1], [0], [0], [1], [0, 0, 1, 1], [], []>} : vector<8x64xbf16>, vector<64x256xbf16>, vector<8x256xf32> -> vector<8x256xf32>
    %307 = vector.extract_strided_slice %5 {offsets = [48, 0], sizes = [8, 256], strides = [1, 1]} : vector<64x256xf32> to vector<8x256xf32>
    %308 = arith.truncf %280 : vector<8x64xf32> to vector<8x64xbf16>
    %c0_101 = arith.constant 0 : index
    %c0_102 = arith.constant 0 : index
    %309 = vector.load %arg3[%c0_101, %c0_102] : memref<64x256xbf16, #tpu.memory_space<vmem>>, vector<64x256xbf16>
    %cst_103 = arith.constant dense<0.000000e+00> : vector<8x256xf32>
    %310 = tpu.matmul %308, %309, %cst_103 {dimension_numbers = #tpu.dot_dimension_numbers<[1], [0], [0], [1], [0, 0, 1, 1], [], []>} : vector<8x64xbf16>, vector<64x256xbf16>, vector<8x256xf32> -> vector<8x256xf32>
    %311 = arith.addf %307, %310 : vector<8x256xf32>
    %312 = vector.extract_strided_slice %311 {offsets = [0, 0], sizes = [8, 192], strides = [1, 1]} : vector<8x256xf32> to vector<8x192xf32>
    %cst_104 = arith.constant 5.000000e-01 : f32
    %313 = vector.broadcast %cst_104 : f32 to vector<8x192xf32>
    %314 = arith.mulf %313, %312 : vector<8x192xf32>
    %315 = math.tanh %314 : vector<8x192xf32>
    %cst_105 = arith.constant 5.000000e-01 : f32
    %316 = vector.broadcast %cst_105 : f32 to vector<8x192xf32>
    %317 = arith.mulf %316, %315 : vector<8x192xf32>
    %cst_106 = arith.constant 5.000000e-01 : f32
    %318 = vector.broadcast %cst_106 : f32 to vector<8x192xf32>
    %319 = arith.addf %317, %318 : vector<8x192xf32>
    %320 = vector.extract_strided_slice %319 {offsets = [0, 0], sizes = [8, 64], strides = [1, 1]} : vector<8x192xf32> to vector<8x64xf32>
    %321 = vector.extract_strided_slice %319 {offsets = [0, 64], sizes = [8, 64], strides = [1, 1]} : vector<8x192xf32> to vector<8x64xf32>
    %322 = vector.extract_strided_slice %319 {offsets = [0, 128], sizes = [8, 64], strides = [1, 1]} : vector<8x192xf32> to vector<8x64xf32>
    %323 = vector.extract_strided_slice %311 {offsets = [0, 192], sizes = [8, 64], strides = [1, 1]} : vector<8x256xf32> to vector<8x64xf32>
    %324 = math.tanh %323 : vector<8x64xf32>
    %325 = arith.mulf %321, %278 : vector<8x64xf32>
    %326 = arith.mulf %320, %324 : vector<8x64xf32>
    %327 = arith.addf %325, %326 : vector<8x64xf32>
    %328 = math.tanh %327 : vector<8x64xf32>
    %329 = arith.mulf %322, %328 : vector<8x64xf32>
    %330 = arith.truncf %329 : vector<8x64xf32> to vector<8x64xbf16>
    %c0_107 = arith.constant 0 : index
    %c0_108 = arith.constant 0 : index
    %331 = vector.load %arg4[%c0_107, %c0_108] : memref<64x256xbf16, #tpu.memory_space<vmem>>, vector<64x256xbf16>
    %cst_109 = arith.constant dense<0.000000e+00> : vector<8x256xf32>
    %332 = tpu.matmul %330, %331, %cst_109 {dimension_numbers = #tpu.dot_dimension_numbers<[1], [0], [0], [1], [0, 0, 1, 1], [], []>} : vector<8x64xbf16>, vector<64x256xbf16>, vector<8x256xf32> -> vector<8x256xf32>
    %333 = arith.addf %332, %306 : vector<8x256xf32>
    %334 = arith.addf %333, %8 : vector<8x256xf32>
    %335 = vector.extract_strided_slice %334 {offsets = [0, 0], sizes = [8, 192], strides = [1, 1]} : vector<8x256xf32> to vector<8x192xf32>
    %cst_110 = arith.constant 5.000000e-01 : f32
    %336 = vector.broadcast %cst_110 : f32 to vector<8x192xf32>
    %337 = arith.mulf %336, %335 : vector<8x192xf32>
    %338 = math.tanh %337 : vector<8x192xf32>
    %cst_111 = arith.constant 5.000000e-01 : f32
    %339 = vector.broadcast %cst_111 : f32 to vector<8x192xf32>
    %340 = arith.mulf %339, %338 : vector<8x192xf32>
    %cst_112 = arith.constant 5.000000e-01 : f32
    %341 = vector.broadcast %cst_112 : f32 to vector<8x192xf32>
    %342 = arith.addf %340, %341 : vector<8x192xf32>
    %343 = vector.extract_strided_slice %342 {offsets = [0, 0], sizes = [8, 64], strides = [1, 1]} : vector<8x192xf32> to vector<8x64xf32>
    %344 = vector.extract_strided_slice %342 {offsets = [0, 64], sizes = [8, 64], strides = [1, 1]} : vector<8x192xf32> to vector<8x64xf32>
    %345 = vector.extract_strided_slice %342 {offsets = [0, 128], sizes = [8, 64], strides = [1, 1]} : vector<8x192xf32> to vector<8x64xf32>
    %346 = vector.extract_strided_slice %334 {offsets = [0, 192], sizes = [8, 64], strides = [1, 1]} : vector<8x256xf32> to vector<8x64xf32>
    %347 = math.tanh %346 : vector<8x64xf32>
    %348 = arith.mulf %344, %301 : vector<8x64xf32>
    %349 = arith.mulf %343, %347 : vector<8x64xf32>
    %350 = arith.addf %348, %349 : vector<8x64xf32>
    %351 = math.tanh %350 : vector<8x64xf32>
    %352 = arith.mulf %345, %351 : vector<8x64xf32>
    %353 = arith.truncf %352 : vector<8x64xf32> to vector<8x64xbf16>
    %c0_113 = arith.constant 0 : index
    %c0_114 = arith.constant 0 : index
    %354 = vector.load %arg5[%c0_113, %c0_114] : memref<64x256xbf16, #tpu.memory_space<vmem>>, vector<64x256xbf16>
    %cst_115 = arith.constant dense<0.000000e+00> : vector<8x256xf32>
    %355 = tpu.matmul %353, %354, %cst_115 {dimension_numbers = #tpu.dot_dimension_numbers<[1], [0], [0], [1], [0, 0, 1, 1], [], []>} : vector<8x64xbf16>, vector<64x256xbf16>, vector<8x256xf32> -> vector<8x256xf32>
    %356 = vector.extract_strided_slice %5 {offsets = [56, 0], sizes = [8, 256], strides = [1, 1]} : vector<64x256xf32> to vector<8x256xf32>
    %357 = arith.truncf %329 : vector<8x64xf32> to vector<8x64xbf16>
    %c0_116 = arith.constant 0 : index
    %c0_117 = arith.constant 0 : index
    %358 = vector.load %arg3[%c0_116, %c0_117] : memref<64x256xbf16, #tpu.memory_space<vmem>>, vector<64x256xbf16>
    %cst_118 = arith.constant dense<0.000000e+00> : vector<8x256xf32>
    %359 = tpu.matmul %357, %358, %cst_118 {dimension_numbers = #tpu.dot_dimension_numbers<[1], [0], [0], [1], [0, 0, 1, 1], [], []>} : vector<8x64xbf16>, vector<64x256xbf16>, vector<8x256xf32> -> vector<8x256xf32>
    %360 = arith.addf %356, %359 : vector<8x256xf32>
    %361 = vector.extract_strided_slice %360 {offsets = [0, 0], sizes = [8, 192], strides = [1, 1]} : vector<8x256xf32> to vector<8x192xf32>
    %cst_119 = arith.constant 5.000000e-01 : f32
    %362 = vector.broadcast %cst_119 : f32 to vector<8x192xf32>
    %363 = arith.mulf %362, %361 : vector<8x192xf32>
    %364 = math.tanh %363 : vector<8x192xf32>
    %cst_120 = arith.constant 5.000000e-01 : f32
    %365 = vector.broadcast %cst_120 : f32 to vector<8x192xf32>
    %366 = arith.mulf %365, %364 : vector<8x192xf32>
    %cst_121 = arith.constant 5.000000e-01 : f32
    %367 = vector.broadcast %cst_121 : f32 to vector<8x192xf32>
    %368 = arith.addf %366, %367 : vector<8x192xf32>
    %369 = vector.extract_strided_slice %368 {offsets = [0, 0], sizes = [8, 64], strides = [1, 1]} : vector<8x192xf32> to vector<8x64xf32>
    %370 = vector.extract_strided_slice %368 {offsets = [0, 64], sizes = [8, 64], strides = [1, 1]} : vector<8x192xf32> to vector<8x64xf32>
    %371 = vector.extract_strided_slice %368 {offsets = [0, 128], sizes = [8, 64], strides = [1, 1]} : vector<8x192xf32> to vector<8x64xf32>
    %372 = vector.extract_strided_slice %360 {offsets = [0, 192], sizes = [8, 64], strides = [1, 1]} : vector<8x256xf32> to vector<8x64xf32>
    %373 = math.tanh %372 : vector<8x64xf32>
    %374 = arith.mulf %370, %327 : vector<8x64xf32>
    %375 = arith.mulf %369, %373 : vector<8x64xf32>
    %376 = arith.addf %374, %375 : vector<8x64xf32>
    %377 = math.tanh %376 : vector<8x64xf32>
    %378 = arith.mulf %371, %377 : vector<8x64xf32>
    %379 = arith.truncf %378 : vector<8x64xf32> to vector<8x64xbf16>
    %c0_122 = arith.constant 0 : index
    %c0_123 = arith.constant 0 : index
    %380 = vector.load %arg4[%c0_122, %c0_123] : memref<64x256xbf16, #tpu.memory_space<vmem>>, vector<64x256xbf16>
    %cst_124 = arith.constant dense<0.000000e+00> : vector<8x256xf32>
    %381 = tpu.matmul %379, %380, %cst_124 {dimension_numbers = #tpu.dot_dimension_numbers<[1], [0], [0], [1], [0, 0, 1, 1], [], []>} : vector<8x64xbf16>, vector<64x256xbf16>, vector<8x256xf32> -> vector<8x256xf32>
    %382 = arith.addf %381, %355 : vector<8x256xf32>
    %383 = arith.addf %382, %8 : vector<8x256xf32>
    %384 = vector.extract_strided_slice %383 {offsets = [0, 0], sizes = [8, 192], strides = [1, 1]} : vector<8x256xf32> to vector<8x192xf32>
    %cst_125 = arith.constant 5.000000e-01 : f32
    %385 = vector.broadcast %cst_125 : f32 to vector<8x192xf32>
    %386 = arith.mulf %385, %384 : vector<8x192xf32>
    %387 = math.tanh %386 : vector<8x192xf32>
    %cst_126 = arith.constant 5.000000e-01 : f32
    %388 = vector.broadcast %cst_126 : f32 to vector<8x192xf32>
    %389 = arith.mulf %388, %387 : vector<8x192xf32>
    %cst_127 = arith.constant 5.000000e-01 : f32
    %390 = vector.broadcast %cst_127 : f32 to vector<8x192xf32>
    %391 = arith.addf %389, %390 : vector<8x192xf32>
    %392 = vector.extract_strided_slice %391 {offsets = [0, 0], sizes = [8, 64], strides = [1, 1]} : vector<8x192xf32> to vector<8x64xf32>
    %393 = vector.extract_strided_slice %391 {offsets = [0, 64], sizes = [8, 64], strides = [1, 1]} : vector<8x192xf32> to vector<8x64xf32>
    %394 = vector.extract_strided_slice %391 {offsets = [0, 128], sizes = [8, 64], strides = [1, 1]} : vector<8x192xf32> to vector<8x64xf32>
    %395 = vector.extract_strided_slice %383 {offsets = [0, 192], sizes = [8, 64], strides = [1, 1]} : vector<8x256xf32> to vector<8x64xf32>
    %396 = math.tanh %395 : vector<8x64xf32>
    %397 = arith.mulf %393, %350 : vector<8x64xf32>
    %398 = arith.mulf %392, %396 : vector<8x64xf32>
    %399 = arith.addf %397, %398 : vector<8x64xf32>
    %400 = math.tanh %399 : vector<8x64xf32>
    %401 = arith.mulf %394, %400 : vector<8x64xf32>
    %c0_128 = arith.constant 0 : index
    %c0_129 = arith.constant 0 : index
    %402 = vector.load %arg7[%c0_128, %c0_129] : memref<1x64xf32, #tpu.memory_space<vmem>>, vector<1x64xf32>
    %403 = vector.broadcast %402 : vector<1x64xf32> to vector<8x64xf32>
    %404 = arith.mulf %401, %403 : vector<8x64xf32>
    %cst_130 = arith.constant dense<0.000000e+00> : vector<8xf32>
    %405 = vector.multi_reduction <add>, %404, %cst_130 [1] : vector<8x64xf32> to vector<8xf32>
    %406 = vector.shape_cast %405 : vector<8xf32> to vector<8x1xf32>
    %c0_131 = arith.constant 0 : index
    %c0_132 = arith.constant 0 : index
    %407 = vector.load %arg8[%c0_131, %c0_132] : memref<1x1xf32, #tpu.memory_space<vmem>>, vector<1x1xf32>
    %408 = vector.broadcast %407 : vector<1x1xf32> to vector<8x1xf32>
    %409 = arith.addf %406, %408 : vector<8x1xf32>
    %410 = vector.extract_strided_slice %409 {offsets = [0, 0], sizes = [2, 1], strides = [1, 1]} : vector<8x1xf32> to vector<2x1xf32>
    %c0_133 = arith.constant 0 : index
    %c0_134 = arith.constant 0 : index
    %411 = vector.load %arg9[%c0_133, %c0_134] : memref<2x1xf32, #tpu.memory_space<vmem>>, vector<2x1xf32>
    tpu.vector_store %arg9[%c0_133, %c0_134], %410 {strides = array<i32>} : memref<2x1xf32, #tpu.memory_space<vmem>>, vector<2x1xf32>,
    return
  }
}

</mosaic_0001>

<bundles_post_ra>
// kernel: tpu_custom_call.1
= control target key start
LH: loop header
LB: loop body
LE: loop exit
PB: predicated region body
PF: predicated region fallthrough
CT: control target
= control target key end

     0   :  { %s2489_s0 = inlined_call_operand.vmem [shape: bf16[64,6], index: 0, kind: input, shape index: {}]   ;;  %s2490_s1 = inlined_call_operand.vmem [shape: bf16[6,256], index: 1, kind: input, shape index: {}]   ;;  %s2491_s2 = inlined_call_operand.vmem [shape: f32[1,256], index: 2, kind: input, shape index: {}]   ;;  %s2492_s3 = inlined_call_operand.hbm [shape: bf16[64,256], index: 3, kind: input, shape index: {}]   ;;  %s2493_s4 = inlined_call_operand.hbm [shape: bf16[64,256], index: 4, kind: input, shape index: {}]   ;;  %s2494_s5 = inlined_call_operand.hbm [shape: bf16[64,256], index: 5, kind: input, shape index: {}]   ;;  %s2495_s6 = inlined_call_operand.vmem [shape: f32[1,256], index: 6, kind: input, shape index: {}]   ;;  %s2496_s7 = inlined_call_operand.vmem [shape: f32[1,64], index: 7, kind: input, shape index: {}]   ;;  %s2497_s8 = inlined_call_operand.<no memory space> [shape: f32[1,1], index: 8, kind: input, shape index: {}]   ;;  %s2498_s9 = inlined_call_operand.vmem [shape: f32[2,1], index: 9, kind: output, shape index: {}]  }
   0x1   :  { %v14_v0 = vstv %s2497_s8 }
   0x2   :  { %15 = vst [vmem:[#allocation2] sm:$0x1] %v14_v0 }
   0x3   :  { %16 = vsyncpa [#allocation4], 0 }
   0x4   :  { %17 = vsyncpa [#allocation6], 0  ;;  %s41_s13 = sshll.u32 %s2493_s4, 4  ;;  %s1912_s14 = smov [#allocation5]   ;;  %s42_s13 = int_to_ptr.hbm [resolvable:$true] %s41_s13 }
   0x5   :  { %s43_s15 = sshll.u32 %s1912_s14, 4  ;;  %s28_s18 = sshll.u32 %s2492_s3, 4  ;;  %s44_s15 = int_to_ptr.vmem [resolvable:$true] %s43_s15  ;;  %s29_s18 = int_to_ptr.hbm [resolvable:$true] %s28_s18 }
   0x6   :  { %s1913_s19 = smov 128   ;;  %s1914_s20 = smov 8  }
   0x7   :  { %49 = dma.hbm_to_vmem [thread:$0]  %s42_s13, 1024, %s44_s15, [#allocation6], %s1913_s19, %s1913_s19, %s1914_s20  }
   0x8   :  { %s1915_s8 = smov [#allocation3]   ;;  %s54_s24 = sshll.u32 %s2494_s5, 4  ;;  %s55_s24 = int_to_ptr.hbm [resolvable:$true] %s54_s24 }
   0x9   :  { %s30_s21 = sshll.u32 %s1915_s8, 4  ;;  %s1916_s4 = smov [#allocation7]   ;;  %s31_s21 = int_to_ptr.vmem [resolvable:$true] %s30_s21 }
   0xa   :  { %36 = dma.hbm_to_vmem [thread:$0]  %s29_s18, 1024, %s31_s21, [#allocation4], %s1913_s19, %s1913_s19, %s1914_s20  }
   0xb   :  { %s56_s25 = sshll.u32 %s1916_s4, 4  ;;  %s57_s25 = int_to_ptr.vmem [resolvable:$true] %s56_s25 }
   0xc   :  { %62 = dma.hbm_to_vmem [thread:$0]  %s55_s24, 1024, %s57_s25, [#allocation6], %s1913_s19, %s1913_s19, %s1914_s20  }
   0xd   :  { %1908 = dma.done.wait [#allocation4], 1024  }
   0xe   :  { %1909 = vsyncadd [#allocation4], 4294966272 }
   0xf   :  { %1910 = dma.done.wait [#allocation6], 2048  }
  0x10   :  { %1911 = vsyncadd [#allocation6], 4294965248  ;;  %v1681_v1 = vld [vmem:[#allocation7 + $0x34] sm:$0xf]  ;;  %v1559_v2 = vld [vmem:[#allocation7 + $0x38] sm:$0xf0] }
  0x11   :  { %v1679_v3 = vld [vmem:[#allocation7 + $0x24] sm:$0xf]  ;;  %v1981_v4 = vor.u32 %v1681_v1, %v1559_v2  ;;  %v1551_v5 = vld [vmem:[#allocation7 + $0x28] sm:$0xf0]  ;;  %v1677_v7 = vld [vmem:[#allocation7 + $0x14] sm:$0xf] }
  0x12   :  { %v1984_v6 = vor.u32 %v1679_v3, %v1551_v5  ;;  %v1543_v8 = vld [vmem:[#allocation7 + $0x18] sm:$0xf0]  ;;  %v1689_v10 = vld [vmem:[#allocation3 + $0x34] sm:$0xf]  ;;  %vm135_vm0 = vcmask 1042432   ;;  %vm122_vm1 = vcmask 48128  }
  0x13   :  { %275 = vmatpush.bf16.msra.mxu3 %v1981_v4  ;;  %v90_v9 = vld [vmem:[%s2490_s1] sm:$0x77]  ;;  %v1557_v13 = vld [vmem:[#allocation7 + $0x30] sm:$0xf]  ;;  %v1682_v14 = vld [vmem:[#allocation7 + $0x34] sm:$0xf0]  ;;  %v1990_v16 = vor.u32 %v1677_v7, %v1543_v8 }
  0x14   :  { %v1591_v11 = vld [vmem:[#allocation3 + $0x38] sm:$0xf0]  ;;  %v119_v12 = vunpack.c.h.b16 %v90_v9  ;;  %v1549_v15 = vld [vmem:[#allocation7 + $0x20] sm:$0xf]  ;;  %v1992_v18 = vor.u32 %v1682_v14, %v1557_v13  ;;  %v1680_v19 = vld [vmem:[#allocation7 + $0x24] sm:$0xf0]  ;;  %v118_v22 = vunpack.c.l.b16 %v90_v9 }
  0x15   :  { %v1675_v20 = vld [vmem:[#allocation7 + $0x4] sm:$0xf]  ;;  %v1535_v21 = vld [vmem:[#allocation7 + $0x8] sm:$0xf0]  ;;  %v1994_v23 = vor.u32 %v1689_v10, %v1591_v11  ;;  %v2001_v26 = vor.u32 %v1680_v19, %v1549_v15  ;;  %v1541_v27 = vld [vmem:[#allocation7 + $0x10] sm:$0xf] }
  0x16   :  { %v121_v17 = vpack.c.b16 %v119_v12, %v119_v12  ;;  %v1671_v25 = vld [vmem:[%s2489_s0] sm:$0xff]  ;;  %262 = vmatpush.bf16.msra.mxu2 %v1992_v18  ;;  %v1678_v28 = vld [vmem:[#allocation7 + $0x14] sm:$0xf0]  ;;  %v1589_v29 = vld [vmem:[#allocation3 + $0x30] sm:$0xf]  ;;  %v120_v31 = vpack.c.b16 %v118_v22, %v118_v22  ;;  %v2004_v32 = vor.u32 %v1675_v20, %v1535_v21  ;;  %v1917_v47 = vmov 0  }
  0x17   :  { %276 = vmatpush.bf16.msra.mxu3 %v1984_v6  ;;  %v1690_v30 = vld [vmem:[#allocation3 + $0x34] sm:$0xf0]  ;;  %v1687_v33 = vld [vmem:[#allocation3 + $0x24] sm:$0xf]  ;;  %v1583_v34 = vld [vmem:[#allocation3 + $0x28] sm:$0xf0]  ;;  %v2010_v36 = vor.u32 %v1678_v28, %v1541_v27 }
  0x18   :  { %v140_v24 = vsel %vm135_vm0, %v121_v17, 0  ;;  %v137_v35 = vsel %vm135_vm0, %v120_v31, 0  ;;  %v1533_v37 = vld [vmem:[#allocation7] sm:$0xf]  ;;  %v2012_v38 = vor.u32 %v1690_v30, %v1589_v29  ;;  %v2014_v39 = vor.u32 %v1687_v33, %v1583_v34  ;;  %v1676_v40 = vld [vmem:[#allocation7 + $0x4] sm:$0xf0] }
  0x19   :  { %178 = vmatpush.bf16.msra.mxu1 %v140_v24  ;;  %v1581_v41 = vld [vmem:[#allocation3 + $0x20] sm:$0xf]  ;;  %v1688_v42 = vld [vmem:[#allocation3 + $0x24] sm:$0xf0]  ;;  %149 = vmatpush.bf16.msra.mxu0 %v137_v35  ;;  %v1685_v43 = vld [vmem:[#allocation3 + $0x14] sm:$0xf]  ;;  %v2021_v45 = vor.u32 %v1676_v40, %v1533_v37 }
  0x1a   :  { %263 = vmatpush.bf16.msra.mxu2 %v2001_v26  ;;  %v1575_v44 = vld [vmem:[#allocation3 + $0x18] sm:$0xf0]  ;;  %v2023_v46 = vor.u32 %v1688_v42, %v1581_v41  ;;  %v1573_v49 = vld [vmem:[#allocation3 + $0x10] sm:$0xf]  ;;  %v1686_v50 = vld [vmem:[#allocation3 + $0x14] sm:$0xf0] }
  0x1b   :  { %277 = vmatpush.bf16.msra.mxu3 %v1990_v16  ;;  %v2026_v48 = vor.u32 %v1685_v43, %v1575_v44  ;;  %v1683_v51 = vld [vmem:[#allocation3 + $0x4] sm:$0xf]  ;;  %v1567_v52 = vld [vmem:[#allocation3 + $0x8] sm:$0xf0]  ;;  %v2032_v53 = vor.u32 %v1686_v50, %v1573_v49  ;;  %v1565_v54 = vld [vmem:[#allocation3] sm:$0xf] }
  0x1c   :  { %1527 = vmatmul.msk.bf16.vlgmr.msra.gmra.mxu1 %vm122_vm1, %v1671_v25  ;;  %1523 = vmatmul.msk.bf16.vlgmr.msra.gmra.mxu0 %vm122_vm1, %v1671_v25  ;;  %v1684_v55 = vld [vmem:[#allocation3 + $0x4] sm:$0xf0]  ;;  %v2035_v56 = vor.u32 %v1683_v51, %v1567_v52  ;;  %v91_v59 = vld [vmem:[%s2491_s2] sm:$0x3]  ;;  %s1918_s29 = smov 64   ;;  %v1673_v50 = vld [vmem:[%s2489_s0 + $0x10] sm:$0xff] }
  0x1d   :  { %539 = vmatpush.bf16.msrb.mxu1 %v1994_v23  ;;  %526 = vmatpush.bf16.msrb.mxu0 %v2012_v38  ;;  %v2039_v57 = vor.u32 %v1684_v55, %v1565_v54  ;;  %v2062_v62 = vperm.slane %v91_v59, 1  ;;  %v2069_v10 = vperm.slane %v91_v59, 0  ;;  %v1672_v22 = vld [vmem:[%s2489_s0 + $0x8] sm:$0xff]  ;;  %v1697_v24 = vld [vmem:[#allocation5 + $0x34] sm:$0xf]  ;;  %vm254_vm2 = vcmask 523264  }
  0x1e   :  { %264 = vmatpush.bf16.msra.mxu2 %v2010_v36  ;;  %v1623_v25 = vld [vmem:[#allocation5 + $0x38] sm:$0xf0]  ;;  %v1621_v27 = vld [vmem:[#allocation5 + $0x30] sm:$0xf]  ;;  %v1698_v29 = vld [vmem:[#allocation5 + $0x34] sm:$0xf0] }
  0x1f   :  { %278 = vmatpush.bf16.msra.mxu3 %v2004_v32  ;;  %v2078_v28 = vor.u32 %v1697_v24, %v1623_v25  ;;  %v1695_v30 = vld [vmem:[#allocation5 + $0x24] sm:$0xf]  ;;  %v1615_v31 = vld [vmem:[#allocation5 + $0x28] sm:$0xf0]  ;;  %v2080_v33 = vor.u32 %v1698_v29, %v1621_v27  ;;  %v1613_v34 = vld [vmem:[#allocation5 + $0x20] sm:$0xf] }
  0x20   :  { %v1696_v35 = vld [vmem:[#allocation5 + $0x24] sm:$0xf0]  ;;  %v2083_v37 = vor.u32 %v1695_v30, %v1615_v31  ;;  %v1693_v41 = vld [vmem:[#allocation5 + $0x14] sm:$0xf]  ;;  %v1607_v42 = vld [vmem:[#allocation5 + $0x18] sm:$0xf0] }
  0x21   :  { %540 = vmatpush.bf16.msrb.mxu1 %v2014_v39  ;;  %527 = vmatpush.bf16.msrb.mxu0 %v2023_v46  ;;  %v2086_v40 = vor.u32 %v1696_v35, %v1613_v34  ;;  %v1605_v43 = vld [vmem:[#allocation5 + $0x10] sm:$0xf]  ;;  %v1694_v44 = vld [vmem:[#allocation5 + $0x14] sm:$0xf0]  ;;  %vm1499_vm3 = vcmask 1024  }
  0x22   :  { %279 = vmatmul.bf16.vlgmr.msra.gmra.mxu3 %v1917_v47  ;;  %265 = vmatpush.bf16.msra.mxu2 %v2021_v45  ;;  %v2092_v49 = vor.u32 %v1694_v44, %v1605_v43  ;;  %v1674_v55 = vld [vmem:[%s2489_s0 + $0x18] sm:$0xff]  ;;  %v200_v44 = vld [vmem:[%s2495_s6] sm:$0x3] }
  0x23   :  { %349 = vmatpush.bf16.msrb.mxu3 %v1994_v23 }
  0x25   :  { %541 = vmatpush.bf16.msrb.mxu1 %v2026_v48  ;;  %528 = vmatpush.bf16.msrb.mxu0 %v2032_v53 }
  0x26   :  { %336 = vmatpush.bf16.msrb.mxu2 %v2012_v38 }
  0x27   :  { %350 = vmatpush.bf16.msrb.mxu3 %v2014_v39  ;;  %266 = vmatmul.bf16.vlgmr.msra.gmra.mxu2 %v1917_v47 }
  0x29   :  { %542 = vmatpush.bf16.msrb.mxu1 %v2035_v56  ;;  %529 = vmatpush.bf16.msrb.mxu0 %v2039_v57 }
  0x2a   :  { %337 = vmatpush.bf16.msrb.mxu2 %v2023_v46 }
  0x2b   :  { %351 = vmatpush.bf16.msrb.mxu3 %v2026_v48 }
  0x2c   :  { %1524 = vmatmul.msk.bf16.gmra.mxu0 %vm122_vm1, %v1672_v22  ;;  %1528 = vmatmul.msk.bf16.gmra.mxu1 %vm122_vm1, %v1672_v22 }
  0x2d   :  { %655 = vmatpush.bf16.msra.mxu1 %v1981_v4  ;;  %642 = vmatpush.bf16.msra.mxu0 %v1992_v18 }
  0x2e   :  { %338 = vmatpush.bf16.msrb.mxu2 %v2032_v53 }
  0x2f   :  { %352 = vmatpush.bf16.msrb.mxu3 %v2035_v56 }
  0x31   :  { %656 = vmatpush.bf16.msra.mxu1 %v1984_v6  ;;  %643 = vmatpush.bf16.msra.mxu0 %v2001_v26 }
  0x32   :  { %353 = vmatmul.bf16.vlgmr.msrb.gmra.mxu3 %v1917_v47  ;;  %339 = vmatpush.bf16.msrb.mxu2 %v2039_v57 }
  0x33   :  { %455 = vmatpush.bf16.msra.mxu3 %v2078_v28 }
  0x35   :  { %657 = vmatpush.bf16.msra.mxu1 %v1990_v16  ;;  %644 = vmatpush.bf16.msra.mxu0 %v2010_v36 }
  0x36   :  { %442 = vmatpush.bf16.msra.mxu2 %v2080_v33 }
  0x37   :  { %340 = vmatmul.bf16.vlgmr.msrb.gmra.mxu2 %v1917_v47  ;;  %456 = vmatpush.bf16.msra.mxu3 %v2083_v37  ;;  %v2089_v47 = vor.u32 %v1693_v41, %v1607_v42 }
  0x39   :  { %658 = vmatpush.bf16.msra.mxu1 %v2004_v32  ;;  %645 = vmatpush.bf16.msra.mxu0 %v2021_v45 }
  0x3a   :  { %443 = vmatpush.bf16.msra.mxu2 %v2086_v40 }
  0x3b   :  { %457 = vmatpush.bf16.msra.mxu3 %v2089_v47 }
  0x3c   :  { %1525 = vmatmul.msk.bf16.gmra.mxu0 %vm122_vm1, %v1673_v50  ;;  %1529 = vmatmul.msk.bf16.gmra.mxu1 %vm122_vm1, %v1673_v50  ;;  %v2173_v50 = vperm.slane %v200_v44, 1 }
  0x3e   :  { %444 = vmatpush.bf16.msra.mxu2 %v2092_v49 }
  0x4c   :  { %1526 = vmatmul.msk.bf16.gmra.mxu0 %vm122_vm1, %v1674_v55  ;;  %1530 = vmatmul.msk.bf16.gmra.mxu1 %vm122_vm1, %v1674_v55 }
  0x99   :  { %v180_v63 = vpop.f32.mrf.mxu1  ;;  %v151_v11 = vpop.f32.mrf.mxu0 }
  0x9a   :  { %v181_v0 = vadd.f32 %v180_v63, %v2062_v62  ;;  %v152_v12 = vadd.f32 %v151_v11, %v2069_v10  ;;  %v1599_v63 = vld [vmem:[#allocation5 + $0x8] sm:$0xf0] }
  0xa5   :  { %v2055_v58 = vpop.f32.mrf.mxu3 }
  0xaa   :  { %v2060_v60 = vpop.f32.mrf.mxu2 }
  0xad   :  { %v282_v61 = vpop.f32.mrf.mxu3 }
  0xae   :  { %v1691_v61 = vld [vmem:[#allocation5 + $0x4] sm:$0xf] }
  0xb2   :  { %v269_v1 = vpop.f32.mrf.mxu2 }
  0xb3   :  { %v2110_v1 = vor.u32 %v1691_v61, %v1599_v63 }
  0xb5   :  { %v354_v2 = vpop.f32.mrf.mxu3  ;;  %458 = vmatpush.bf16.msra.mxu3 %v2110_v1 }
  0xb6   :  { %v2065_v3 = vadd.f32 %v354_v2, %v181_v0  ;;  %v1597_v0 = vld [vmem:[#allocation5] sm:$0xf]  ;;  %v1692_v2 = vld [vmem:[#allocation5 + $0x4] sm:$0xf0] }
  0xb8   :  { %1708 = vtanh.f32 %v2065_v3 }
  0xb9   :  { %513 = vmatpush.bf16.msrb.mxu3 %v1981_v4 }
  0xba   :  { %v341_v5 = vpop.f32.mrf.mxu2 }
  0xbb   :  { %v358_v13 = vadd.f32 %v341_v5, %v152_v12  ;;  %v2112_v5 = vor.u32 %v1692_v2, %v1597_v0 }
  0xbd   :  { %v356_v7 = vpop.f32.mrf.mxu3  ;;  %v360_v14 = vmul.f32 0.5, %v358_v13  ;;  %445 = vmatpush.bf16.msra.mxu2 %v2112_v5  ;;  %514 = vmatpush.bf16.msrb.mxu3 %v1984_v6 }
  0xbe   :  { %v1709_v8 = vpop.eup %1708  ;;  %v361_v7 = vmul.f32 0.5, %v2065_v3  ;;  %v182_v3 = vpop.f32.mrf.mxu1 }
  0xbf   :  { %371 = vrot.lane.b32.xlu0 %v1709_v8, %s1918_s29  ;;  %1710 = vtanh.f32 %v360_v14  ;;  %v183_v35 = vadd.f32 %v182_v3, %v2062_v62 }
  0xc1   :  { %500 = vmatpush.bf16.msrb.mxu2 %v1992_v18  ;;  %515 = vmatpush.bf16.msrb.mxu3 %v1990_v16 }
  0xc2   :  { %v343_v9 = vpop.f32.mrf.mxu2 }
  0xc5   :  { %v1711_v15 = vpop.eup %1710  ;;  %501 = vmatpush.bf16.msrb.mxu2 %v2001_v26  ;;  %516 = vmatpush.bf16.msrb.mxu3 %v2004_v32 }
  0xc6   :  { %v364_v17 = vmul.f32 0.5, %v1711_v15  ;;  %v153_v15 = vpop.f32.mrf.mxu0 }
  0xc8   :  { %v366_v19 = vadd.f32 0.5, %v364_v17 }
  0xc9   :  { %502 = vmatpush.bf16.msrb.mxu2 %v2010_v36 }
  0xca   :  { %v369_v51 = vmul.f32 0.0, %v366_v19 }
  0xcd   :  { %503 = vmatpush.bf16.msrb.mxu2 %v2021_v45 }
  0xce   :  { %v2145_v17 = vpop.f32.mrf.mxu0 }
 0x131   :  { %v372_v20 = vpop.permute.xlu0 %371 }
 0x132   :  { %v374_v21 = vmul.f32 %v372_v20, %v366_v19  ;;  %v2147_v19 = vpop.f32.mrf.mxu1  ;;  %v2149_v20 = vpop.f32.mrf.mxu0 }
 0x134   :  { %376 = vrot.lane.b32.xlu0 %v374_v21, %s1918_s29 }
 0x13a   :  { %v2151_v21 = vpop.f32.mrf.mxu1  ;;  %v2153_v22 = vpop.f32.mrf.mxu0 }
 0x142   :  { %v2155_v24 = vpop.f32.mrf.mxu1  ;;  %v2157_v25 = vpop.f32.mrf.mxu0 }
 0x14a   :  { %v2159_v27 = vpop.f32.mrf.mxu1  ;;  %v2161_v29 = vpop.f32.mrf.mxu0 }
 0x152   :  { %v2163_v30 = vpop.f32.mrf.mxu1  ;;  %v2165_v31 = vpop.f32.mrf.mxu0 }
 0x15a   :  { %v2167_v34 = vpop.f32.mrf.mxu1 }
 0x1a6   :  { %v377_v52 = vpop.permute.xlu0 %376 }
 0x1a7   :  { %v2101_v54 = vadd.f32 %v377_v52, %v369_v51 }
 0x1a9   :  { %1712 = vtanh.f32 %v2101_v54 }
 0x1aa   :  { %1714 = vtanh.f32 %v361_v7 }
 0x1af   :  { %v1713_v59 = vpop.eup %1712 }
 0x1b0   :  { %382 = vrot.lane.b32.xlu1 %v1713_v59, %s1918_s29  ;;  %v1715_v8 = vpop.eup %1714 }
 0x1b1   :  { %v365_v9 = vmul.f32 0.5, %v1715_v8 }
 0x1b3   :  { %v367_v11 = vadd.f32 0.5, %v365_v9  ;;  %v154_v9 = vadd.f32 %v153_v15, %v2069_v10 }
 0x222   :  { %v383_v12 = vpop.permute.xlu1 %382 }
 0x223   :  { %v385_v13 = vmul.f32 %v383_v12, %v367_v11 }
 0x225   :  { %v386_v14 = vpack.c.bf16 %v385_v13, %v385_v13 }
 0x227   :  { %1627 = vmatmul.msk.bf16.vlgmr.msra.gmra.mxu2 %vm254_vm2, %v386_v14  ;;  %1628 = vmatmul.msk.bf16.vlgmr.msra.gmra.mxu3 %vm254_vm2, %v386_v14 }
 0x228   :  { %1631 = vmatmul.msk.bf16.vlgmr.msrb.gmra.mxu0 %vm254_vm2, %v386_v14  ;;  %1632 = vmatmul.msk.bf16.vlgmr.msrb.gmra.mxu1 %vm254_vm2, %v386_v14 }
 0x229   :  { %597 = vmatpush.bf16.msra.mxu3 %v2078_v28  ;;  %584 = vmatpush.bf16.msra.mxu2 %v2080_v33 }
 0x22a   :  { %739 = vmatpush.bf16.msrb.mxu1 %v2078_v28  ;;  %726 = vmatpush.bf16.msrb.mxu0 %v2080_v33 }
 0x22d   :  { %598 = vmatpush.bf16.msra.mxu3 %v2083_v37  ;;  %585 = vmatpush.bf16.msra.mxu2 %v2086_v40 }
 0x22e   :  { %740 = vmatpush.bf16.msrb.mxu1 %v2083_v37  ;;  %727 = vmatpush.bf16.msrb.mxu0 %v2086_v40 }
 0x231   :  { %599 = vmatpush.bf16.msra.mxu3 %v2089_v47  ;;  %586 = vmatpush.bf16.msra.mxu2 %v2092_v49 }
 0x232   :  { %741 = vmatpush.bf16.msrb.mxu1 %v2089_v47  ;;  %728 = vmatpush.bf16.msrb.mxu0 %v2092_v49 }
 0x235   :  { %600 = vmatpush.bf16.msra.mxu3 %v2110_v1  ;;  %587 = vmatpush.bf16.msra.mxu2 %v2112_v5 }
 0x236   :  { %742 = vmatpush.bf16.msrb.mxu1 %v2110_v1  ;;  %729 = vmatpush.bf16.msrb.mxu0 %v2112_v5 }
 0x2a5   :  { %v531_v41 = vpop.f32.mrf.mxu0  ;;  %v544_v42 = vpop.f32.mrf.mxu1 }
 0x2a6   :  { %v549_v43 = vadd.f32 %v544_v42, %v183_v35  ;;  %v548_v11 = vadd.f32 %v531_v41, %v154_v9  ;;  %v2181_v42 = vperm.slane %v200_v44, 0 }
 0x2a8   :  { %1716 = vtanh.f32 %v549_v43  ;;  %v550_v12 = vmul.f32 0.5, %v548_v11 }
 0x2aa   :  { %v447_v51 = vpop.f32.mrf.mxu2  ;;  %v460_v52 = vpop.f32.mrf.mxu3 }
 0x2ab   :  { %v461_v55 = vadd.f32 %v460_v52, %v2055_v58  ;;  %v448_v52 = vadd.f32 %v447_v51, %v2060_v60 }
 0x2ad   :  { %v465_v59 = vadd.f32 %v461_v55, %v2173_v50  ;;  %v533_v61 = vpop.f32.mrf.mxu0  ;;  %v546_v63 = vpop.f32.mrf.mxu1  ;;  %v464_v55 = vadd.f32 %v448_v52, %v2181_v42 }
 0x2ae   :  { %v1717_v0 = vpop.eup %1716 }
 0x2af   :  { %1718 = vtanh.f32 %v465_v59  ;;  %561 = vrot.lane.b32.xlu2 %v1717_v0, %s1918_s29  ;;  %v466_v61 = vmul.f32 0.5, %v464_v55 }
 0x2b0   :  { %1720 = vtanh.f32 %v550_v12 }
 0x2b1   :  { %1722 = vtanh.f32 %v466_v61 }
 0x2b2   :  { %v449_v2 = vpop.f32.mrf.mxu2  ;;  %v462_v7 = vpop.f32.mrf.mxu3 }
 0x2b5   :  { %v1719_v8 = vpop.eup %1718 }
 0x2b6   :  { %477 = vrot.lane.b32.xlu1 %v1719_v8, %s1918_s29  ;;  %v1721_v13 = vpop.eup %1720 }
 0x2b7   :  { %v554_v58 = vmul.f32 0.5, %v1721_v13  ;;  %v1723_v63 = vpop.eup %1722  ;;  %v467_v13 = vmul.f32 0.5, %v465_v59 }
 0x2b8   :  { %v470_v15 = vmul.f32 0.5, %v1723_v63 }
 0x2b9   :  { %v556_v14 = vadd.f32 0.5, %v554_v58 }
 0x2ba   :  { %v472_v41 = vadd.f32 0.5, %v470_v15 }
 0x2bb   :  { %v559_v7 = vmul.f32 %v556_v14, %v2101_v54 }
 0x2bc   :  { %v475_v44 = vmul.f32 0.0, %v472_v41 }
 0x309   :  { %v562_v3 = vpop.permute.xlu2 %561 }
 0x30a   :  { %v564_v35 = vmul.f32 %v562_v3, %v556_v14  ;;  %v551_v14 = vmul.f32 0.5, %v549_v43 }
 0x30c   :  { %566 = vrot.lane.b32.xlu0 %v564_v35, %s1918_s29 }
 0x328   :  { %v478_v0 = vpop.permute.xlu1 %477 }
 0x329   :  { %v480_v2 = vmul.f32 %v478_v0, %v472_v41 }
 0x32b   :  { %482 = vrot.lane.b32.xlu2 %v480_v2, %s1918_s29 }
 0x37e   :  { %v567_v8 = vpop.permute.xlu0 %566 }
 0x37f   :  { %v2187_v9 = vadd.f32 %v567_v8, %v559_v7 }
 0x381   :  { %1724 = vtanh.f32 %v2187_v9 }
 0x385   :  { %v483_v60 = vpop.permute.xlu2 %482 }
 0x386   :  { %v2190_v51 = vadd.f32 %v483_v60, %v475_v44 }
 0x387   :  { %v1725_v11 = vpop.eup %1724 }
 0x388   :  { %1726 = vtanh.f32 %v2190_v51  ;;  %572 = vrot.lane.b32.xlu2 %v1725_v11, %s1918_s29 }
 0x389   :  { %1728 = vtanh.f32 %v467_v13 }
 0x38a   :  { %1730 = vtanh.f32 %v551_v14 }
 0x38e   :  { %v1727_v12 = vpop.eup %1726 }
 0x38f   :  { %488 = vrot.lane.b32.xlu1 %v1727_v12, %s1918_s29  ;;  %v1729_v54 = vpop.eup %1728 }
 0x390   :  { %v471_v58 = vmul.f32 0.5, %v1729_v54  ;;  %v1731_v61 = vpop.eup %1730 }
 0x391   :  { %v555_v63 = vmul.f32 0.5, %v1731_v61 }
 0x392   :  { %v473_v3 = vadd.f32 0.5, %v471_v58 }
 0x393   :  { %v557_v59 = vadd.f32 0.5, %v555_v63 }
 0x3e2   :  { %v573_v43 = vpop.permute.xlu2 %572 }
 0x3e3   :  { %v575_v15 = vmul.f32 %v573_v43, %v557_v59 }
 0x3e5   :  { %v576_v41 = vpack.c.bf16 %v575_v15, %v575_v15 }
 0x401   :  { %v489_v35 = vpop.permute.xlu1 %488 }
 0x402   :  { %v491_v52 = vmul.f32 %v489_v35, %v473_v3  ;;  %v157_v3 = vadd.f32 %v2145_v17, %v2069_v10  ;;  %v186_v35 = vadd.f32 %v2147_v19, %v2062_v62 }
 0x404   :  { %v492_v55 = vpack.c.bf16 %v491_v52, %v491_v52 }
 0x406   :  { %1629 = vmatmul.msk.bf16.vlgmr.msrb.gmra.mxu2 %vm254_vm2, %v492_v55  ;;  %1630 = vmatmul.msk.bf16.vlgmr.msrb.gmra.mxu3 %vm254_vm2, %v492_v55 }
 0x407   :  { %668 = vmatpush.bf16.msrb.mxu2 %v2012_v38  ;;  %681 = vmatpush.bf16.msrb.mxu3 %v1994_v23 }
 0x40b   :  { %669 = vmatpush.bf16.msrb.mxu2 %v2023_v46  ;;  %682 = vmatpush.bf16.msrb.mxu3 %v2014_v39 }
 0x40f   :  { %670 = vmatpush.bf16.msrb.mxu2 %v2032_v53  ;;  %683 = vmatpush.bf16.msrb.mxu3 %v2026_v48 }
 0x413   :  { %671 = vmatpush.bf16.msrb.mxu2 %v2039_v57  ;;  %684 = vmatpush.bf16.msrb.mxu3 %v2035_v56 }
 0x416   :  { %1633 = vmatmul.msk.bf16.vlgmr.msra.gmra.mxu2 %vm254_vm2, %v576_v41  ;;  %1634 = vmatmul.msk.bf16.vlgmr.msra.gmra.mxu3 %vm254_vm2, %v576_v41 }
 0x417   :  { %797 = vmatpush.bf16.msra.mxu3 %v1981_v4  ;;  %784 = vmatpush.bf16.msra.mxu2 %v1992_v18 }
 0x41b   :  { %798 = vmatpush.bf16.msra.mxu3 %v1984_v6  ;;  %785 = vmatpush.bf16.msra.mxu2 %v2001_v26 }
 0x41f   :  { %799 = vmatpush.bf16.msra.mxu3 %v1990_v16  ;;  %786 = vmatpush.bf16.msra.mxu2 %v2010_v36 }
 0x423   :  { %800 = vmatpush.bf16.msra.mxu3 %v2004_v32  ;;  %787 = vmatpush.bf16.msra.mxu2 %v2021_v45 }
 0x426   :  { %1637 = vmatmul.msk.bf16.vlgmr.msrb.gmra.mxu2 %vm254_vm2, %v576_v41  ;;  %1638 = vmatmul.msk.bf16.vlgmr.msrb.gmra.mxu3 %vm254_vm2, %v576_v41 }
 0x427   :  { %881 = vmatpush.bf16.msrb.mxu3 %v2078_v28  ;;  %868 = vmatpush.bf16.msrb.mxu2 %v2080_v33 }
 0x42b   :  { %882 = vmatpush.bf16.msrb.mxu3 %v2083_v37  ;;  %869 = vmatpush.bf16.msrb.mxu2 %v2086_v40 }
 0x42f   :  { %883 = vmatpush.bf16.msrb.mxu3 %v2089_v47  ;;  %870 = vmatpush.bf16.msrb.mxu2 %v2092_v49 }
 0x433   :  { %884 = vmatpush.bf16.msrb.mxu3 %v2110_v1  ;;  %871 = vmatpush.bf16.msrb.mxu2 %v2112_v5 }
 0x489   :  { %v505_v0 = vpop.f32.mrf.mxu2  ;;  %v518_v2 = vpop.f32.mrf.mxu3 }
 0x491   :  { %v507_v7 = vpop.f32.mrf.mxu2  ;;  %v520_v8 = vpop.f32.mrf.mxu3 }
 0x499   :  { %v589_v44 = vpop.f32.mrf.mxu2  ;;  %v602_v60 = vpop.f32.mrf.mxu3 }
 0x49a   :  { %v590_v11 = vadd.f32 %v589_v44, %v505_v0  ;;  %v603_v12 = vadd.f32 %v602_v60, %v518_v2 }
 0x49c   :  { %v607_v13 = vadd.f32 %v603_v12, %v2173_v50  ;;  %v606_v41 = vadd.f32 %v590_v11, %v2181_v42 }
 0x49e   :  { %1732 = vtanh.f32 %v607_v13  ;;  %v608_v0 = vmul.f32 0.5, %v606_v41 }
 0x4a1   :  { %v591_v54 = vpop.f32.mrf.mxu2  ;;  %v604_v58 = vpop.f32.mrf.mxu3 }
 0x4a4   :  { %v1733_v14 = vpop.eup %1732 }
 0x4a5   :  { %619 = vrot.lane.b32.xlu0 %v1733_v14, %s1918_s29 }
 0x4a9   :  { %v673_v52 = vpop.f32.mrf.mxu2  ;;  %v686_v55 = vpop.f32.mrf.mxu3 }
 0x4aa   :  { %v690_v61 = vadd.f32 %v673_v52, %v157_v3  ;;  %v691_v63 = vadd.f32 %v686_v55, %v186_v35 }
 0x4ac   :  { %1734 = vtanh.f32 %v691_v63  ;;  %v692_v17 = vmul.f32 0.5, %v690_v61 }
 0x4ad   :  { %1736 = vtanh.f32 %v608_v0  ;;  %v693_v0 = vmul.f32 0.5, %v691_v63 }
 0x4ae   :  { %1738 = vtanh.f32 %v692_v17 }
 0x4b1   :  { %v675_v43 = vpop.f32.mrf.mxu2  ;;  %v688_v59 = vpop.f32.mrf.mxu3 }
 0x4b2   :  { %v1735_v15 = vpop.eup %1734 }
 0x4b3   :  { %703 = vrot.lane.b32.xlu1 %v1735_v15, %s1918_s29  ;;  %v1737_v2 = vpop.eup %1736  ;;  %v609_v15 = vmul.f32 0.5, %v607_v13 }
 0x4b4   :  { %v612_v7 = vmul.f32 0.5, %v1737_v2  ;;  %v1739_v60 = vpop.eup %1738 }
 0x4b5   :  { %v696_v12 = vmul.f32 0.5, %v1739_v60 }
 0x4b6   :  { %v614_v8 = vadd.f32 0.5, %v612_v7 }
 0x4b7   :  { %v698_v54 = vadd.f32 0.5, %v696_v12 }
 0x4b8   :  { %v617_v11 = vmul.f32 %v614_v8, %v2190_v51 }
 0x4b9   :  { %v701_v55 = vmul.f32 %v698_v54, %v2187_v9 }
 0x517   :  { %v620_v19 = vpop.permute.xlu0 %619 }
 0x518   :  { %v622_v44 = vmul.f32 %v620_v19, %v614_v8 }
 0x51a   :  { %624 = vrot.lane.b32.xlu2 %v622_v44, %s1918_s29 }
 0x525   :  { %v704_v58 = vpop.permute.xlu1 %703 }
 0x526   :  { %v706_v14 = vmul.f32 %v704_v58, %v698_v54 }
 0x528   :  { %708 = vrot.lane.b32.xlu0 %v706_v14, %s1918_s29 }
 0x574   :  { %v625_v3 = vpop.permute.xlu2 %624 }
 0x575   :  { %v2236_v35 = vadd.f32 %v625_v3, %v617_v11 }
 0x577   :  { %1740 = vtanh.f32 %v2236_v35 }
 0x57d   :  { %v1741_v52 = vpop.eup %1740 }
 0x57e   :  { %630 = vrot.lane.b32.xlu1 %v1741_v52, %s1918_s29 }
 0x59a   :  { %v709_v61 = vpop.permute.xlu0 %708 }
 0x59b   :  { %v2241_v43 = vadd.f32 %v709_v61, %v701_v55 }
 0x59d   :  { %1742 = vtanh.f32 %v2241_v43 }
 0x59e   :  { %1744 = vtanh.f32 %v609_v15 }
 0x59f   :  { %1746 = vtanh.f32 %v693_v0 }
 0x5a3   :  { %v1743_v59 = vpop.eup %1742 }
 0x5a4   :  { %714 = vrot.lane.b32.xlu2 %v1743_v59, %s1918_s29  ;;  %v1745_v51 = vpop.eup %1744 }
 0x5a5   :  { %v613_v41 = vmul.f32 0.5, %v1745_v51  ;;  %v1747_v9 = vpop.eup %1746 }
 0x5a6   :  { %v697_v19 = vmul.f32 0.5, %v1747_v9 }
 0x5a7   :  { %v615_v2 = vadd.f32 0.5, %v613_v41  ;;  %v188_v41 = vadd.f32 %v2151_v21, %v2062_v62 }
 0x5a8   :  { %v699_v13 = vadd.f32 0.5, %v697_v19 }
 0x5f0   :  { %v631_v7 = vpop.permute.xlu1 %630 }
 0x5f1   :  { %v633_v17 = vmul.f32 %v631_v7, %v615_v2 }
 0x5f3   :  { %v634_v8 = vpack.c.bf16 %v633_v17, %v633_v17 }
 0x5f5   :  { %1635 = vmatmul.msk.bf16.vlgmr.msra.gmra.mxu0 %vm254_vm2, %v634_v8  ;;  %1636 = vmatmul.msk.bf16.vlgmr.msra.gmra.mxu1 %vm254_vm2, %v634_v8 }
 0x5f6   :  { %810 = vmatpush.bf16.msra.mxu0 %v2012_v38  ;;  %823 = vmatpush.bf16.msra.mxu1 %v1994_v23 }
 0x5fa   :  { %811 = vmatpush.bf16.msra.mxu0 %v2023_v46  ;;  %824 = vmatpush.bf16.msra.mxu1 %v2014_v39 }
 0x5fe   :  { %v715_v63 = vpop.permute.xlu2 %714  ;;  %812 = vmatpush.bf16.msra.mxu0 %v2032_v53  ;;  %825 = vmatpush.bf16.msra.mxu1 %v2026_v48 }
 0x5ff   :  { %v717_v44 = vmul.f32 %v715_v63, %v699_v13  ;;  %v159_v63 = vadd.f32 %v2149_v20, %v2069_v10 }
 0x601   :  { %v718_v60 = vpack.c.bf16 %v717_v44, %v717_v44 }
 0x602   :  { %813 = vmatpush.bf16.msra.mxu0 %v2039_v57  ;;  %826 = vmatpush.bf16.msra.mxu1 %v2035_v56 }
 0x605   :  { %1639 = vmatmul.msk.bf16.vlgmr.msrb.gmra.mxu0 %vm254_vm2, %v718_v60  ;;  %1640 = vmatmul.msk.bf16.vlgmr.msrb.gmra.mxu1 %vm254_vm2, %v718_v60 }
 0x606   :  { %939 = vmatpush.bf16.msrb.mxu1 %v1981_v4  ;;  %926 = vmatpush.bf16.msrb.mxu0 %v1992_v18 }
 0x60a   :  { %940 = vmatpush.bf16.msrb.mxu1 %v1984_v6  ;;  %927 = vmatpush.bf16.msrb.mxu0 %v2001_v26 }
 0x60e   :  { %941 = vmatpush.bf16.msrb.mxu1 %v1990_v16  ;;  %928 = vmatpush.bf16.msrb.mxu0 %v2010_v36 }
 0x612   :  { %942 = vmatpush.bf16.msrb.mxu1 %v2004_v32  ;;  %929 = vmatpush.bf16.msrb.mxu0 %v2021_v45 }
 0x615   :  { %1643 = vmatmul.msk.bf16.vlgmr.msra.gmra.mxu0 %vm254_vm2, %v718_v60  ;;  %1644 = vmatmul.msk.bf16.vlgmr.msra.gmra.mxu1 %vm254_vm2, %v718_v60 }
 0x616   :  { %1023 = vmatpush.bf16.msra.mxu1 %v2078_v28  ;;  %1010 = vmatpush.bf16.msra.mxu0 %v2080_v33 }
 0x61a   :  { %1024 = vmatpush.bf16.msra.mxu1 %v2083_v37  ;;  %1011 = vmatpush.bf16.msra.mxu0 %v2086_v40 }
 0x61e   :  { %1025 = vmatpush.bf16.msra.mxu1 %v2089_v47  ;;  %1012 = vmatpush.bf16.msra.mxu0 %v2092_v49 }
 0x622   :  { %1026 = vmatpush.bf16.msra.mxu1 %v2110_v1  ;;  %1013 = vmatpush.bf16.msra.mxu0 %v2112_v5 }
 0x672   :  { %v647_v12 = vpop.f32.mrf.mxu0  ;;  %v660_v54 = vpop.f32.mrf.mxu1 }
 0x67a   :  { %v649_v58 = vpop.f32.mrf.mxu0  ;;  %v662_v14 = vpop.f32.mrf.mxu1 }
 0x682   :  { %v731_v11 = vpop.f32.mrf.mxu0  ;;  %v744_v3 = vpop.f32.mrf.mxu1 }
 0x683   :  { %v732_v52 = vadd.f32 %v731_v11, %v647_v12  ;;  %v745_v55 = vadd.f32 %v744_v3, %v660_v54 }
 0x685   :  { %v749_v61 = vadd.f32 %v745_v55, %v2173_v50  ;;  %v748_v19 = vadd.f32 %v732_v52, %v2181_v42 }
 0x687   :  { %1748 = vtanh.f32 %v749_v61  ;;  %v750_v13 = vmul.f32 0.5, %v748_v19 }
 0x68a   :  { %v733_v59 = vpop.f32.mrf.mxu0  ;;  %v746_v15 = vpop.f32.mrf.mxu1 }
 0x68d   :  { %v1749_v51 = vpop.eup %1748 }
 0x68e   :  { %761 = vrot.lane.b32.xlu0 %v1749_v51, %s1918_s29 }
 0x692   :  { %v815_v0 = vpop.f32.mrf.mxu0  ;;  %v828_v2 = vpop.f32.mrf.mxu1 }
 0x693   :  { %v833_v7 = vadd.f32 %v828_v2, %v188_v41  ;;  %v832_v60 = vadd.f32 %v815_v0, %v159_v63 }
 0x695   :  { %1750 = vtanh.f32 %v833_v7  ;;  %v834_v21 = vmul.f32 0.5, %v832_v60 }
 0x696   :  { %1752 = vtanh.f32 %v750_v13  ;;  %v835_v13 = vmul.f32 0.5, %v833_v7 }
 0x697   :  { %1754 = vtanh.f32 %v834_v21 }
 0x69a   :  { %v817_v17 = vpop.f32.mrf.mxu0  ;;  %v830_v8 = vpop.f32.mrf.mxu1 }
 0x69b   :  { %v1751_v9 = vpop.eup %1750 }
 0x69c   :  { %845 = vrot.lane.b32.xlu1 %v1751_v9, %s1918_s29  ;;  %v1753_v44 = vpop.eup %1752  ;;  %v751_v9 = vmul.f32 0.5, %v749_v61 }
 0x69d   :  { %v754_v12 = vmul.f32 0.5, %v1753_v44  ;;  %v1755_v11 = vpop.eup %1754 }
 0x69e   :  { %v838_v3 = vmul.f32 0.5, %v1755_v11 }
 0x69f   :  { %v756_v54 = vadd.f32 0.5, %v754_v12 }
 0x6a0   :  { %v840_v55 = vadd.f32 0.5, %v838_v3 }
 0x6a1   :  { %v759_v15 = vmul.f32 %v756_v54, %v2236_v35 }
 0x6a2   :  { %v843_v0 = vmul.f32 %v840_v55, %v2241_v43 }
 0x700   :  { %v762_v58 = vpop.permute.xlu0 %761 }
 0x701   :  { %v764_v14 = vmul.f32 %v762_v58, %v756_v54 }
 0x703   :  { %766 = vrot.lane.b32.xlu2 %v764_v14, %s1918_s29 }
 0x70e   :  { %v846_v59 = vpop.permute.xlu1 %845 }
 0x70f   :  { %v848_v52 = vmul.f32 %v846_v59, %v840_v55 }
 0x711   :  { %850 = vrot.lane.b32.xlu0 %v848_v52, %s1918_s29 }
 0x75d   :  { %v767_v20 = vpop.permute.xlu2 %766 }
 0x75e   :  { %v2286_v51 = vadd.f32 %v767_v20, %v759_v15 }
 0x760   :  { %1756 = vtanh.f32 %v2286_v51 }
 0x766   :  { %v1757_v41 = vpop.eup %1756 }
 0x767   :  { %772 = vrot.lane.b32.xlu1 %v1757_v41, %s1918_s29 }
 0x783   :  { %v851_v2 = vpop.permute.xlu0 %850 }
 0x784   :  { %v2291_v17 = vadd.f32 %v851_v2, %v843_v0 }
 0x786   :  { %1758 = vtanh.f32 %v2291_v17 }
 0x787   :  { %1760 = vtanh.f32 %v751_v9  ;;  %v162_v9 = vadd.f32 %v2153_v22, %v2069_v10 }
 0x788   :  { %1762 = vtanh.f32 %v835_v13 }
 0x78c   :  { %v1759_v8 = vpop.eup %1758 }
 0x78d   :  { %856 = vrot.lane.b32.xlu2 %v1759_v8, %s1918_s29  ;;  %v1761_v35 = vpop.eup %1760 }
 0x78e   :  { %v755_v19 = vmul.f32 0.5, %v1761_v35  ;;  %v1763_v43 = vpop.eup %1762  ;;  %v191_v35 = vadd.f32 %v2155_v24, %v2062_v62 }
 0x78f   :  { %v839_v21 = vmul.f32 0.5, %v1763_v43 }
 0x790   :  { %v757_v63 = vadd.f32 0.5, %v755_v19 }
 0x791   :  { %v841_v61 = vadd.f32 0.5, %v839_v21 }
 0x7d9   :  { %v773_v44 = vpop.permute.xlu1 %772 }
 0x7da   :  { %v775_v60 = vmul.f32 %v773_v44, %v757_v63 }
 0x7dc   :  { %v776_v12 = vpack.c.bf16 %v775_v60, %v775_v60 }
 0x7de   :  { %1641 = vmatmul.msk.bf16.vlgmr.msra.gmra.mxu2 %vm254_vm2, %v776_v12  ;;  %1642 = vmatmul.msk.bf16.vlgmr.msra.gmra.mxu3 %vm254_vm2, %v776_v12 }
 0x7df   :  { %952 = vmatpush.bf16.msra.mxu2 %v2012_v38  ;;  %965 = vmatpush.bf16.msra.mxu3 %v1994_v23 }
 0x7e3   :  { %953 = vmatpush.bf16.msra.mxu2 %v2023_v46  ;;  %966 = vmatpush.bf16.msra.mxu3 %v2014_v39 }
 0x7e7   :  { %v857_v7 = vpop.permute.xlu2 %856  ;;  %954 = vmatpush.bf16.msra.mxu2 %v2032_v53  ;;  %967 = vmatpush.bf16.msra.mxu3 %v2026_v48 }
 0x7e8   :  { %v859_v54 = vmul.f32 %v857_v7, %v841_v61 }
 0x7ea   :  { %v860_v58 = vpack.c.bf16 %v859_v54, %v859_v54 }
 0x7eb   :  { %955 = vmatpush.bf16.msra.mxu2 %v2039_v57  ;;  %968 = vmatpush.bf16.msra.mxu3 %v2035_v56 }
 0x7ee   :  { %1645 = vmatmul.msk.bf16.vlgmr.msrb.gmra.mxu2 %vm254_vm2, %v860_v58  ;;  %1646 = vmatmul.msk.bf16.vlgmr.msrb.gmra.mxu3 %vm254_vm2, %v860_v58 }
 0x7ef   :  { %1081 = vmatpush.bf16.msrb.mxu3 %v1981_v4  ;;  %1068 = vmatpush.bf16.msrb.mxu2 %v1992_v18 }
 0x7f3   :  { %1082 = vmatpush.bf16.msrb.mxu3 %v1984_v6  ;;  %1069 = vmatpush.bf16.msrb.mxu2 %v2001_v26 }
 0x7f7   :  { %1083 = vmatpush.bf16.msrb.mxu3 %v1990_v16  ;;  %1070 = vmatpush.bf16.msrb.mxu2 %v2010_v36 }
 0x7fb   :  { %1084 = vmatpush.bf16.msrb.mxu3 %v2004_v32  ;;  %1071 = vmatpush.bf16.msrb.mxu2 %v2021_v45 }
 0x7fe   :  { %1649 = vmatmul.msk.bf16.vlgmr.msra.gmra.mxu2 %vm254_vm2, %v860_v58  ;;  %1650 = vmatmul.msk.bf16.vlgmr.msra.gmra.mxu3 %vm254_vm2, %v860_v58 }
 0x7ff   :  { %1165 = vmatpush.bf16.msra.mxu3 %v2078_v28  ;;  %1152 = vmatpush.bf16.msra.mxu2 %v2080_v33 }
 0x803   :  { %1166 = vmatpush.bf16.msra.mxu3 %v2083_v37  ;;  %1153 = vmatpush.bf16.msra.mxu2 %v2086_v40 }
 0x807   :  { %1167 = vmatpush.bf16.msra.mxu3 %v2089_v47  ;;  %1154 = vmatpush.bf16.msra.mxu2 %v2092_v49 }
 0x80b   :  { %1168 = vmatpush.bf16.msra.mxu3 %v2110_v1  ;;  %1155 = vmatpush.bf16.msra.mxu2 %v2112_v5 }
 0x861   :  { %v789_v14 = vpop.f32.mrf.mxu2  ;;  %v802_v11 = vpop.f32.mrf.mxu3 }
 0x869   :  { %v791_v3 = vpop.f32.mrf.mxu2  ;;  %v804_v55 = vpop.f32.mrf.mxu3 }
 0x871   :  { %v873_v59 = vpop.f32.mrf.mxu2  ;;  %v886_v52 = vpop.f32.mrf.mxu3 }
 0x872   :  { %v874_v15 = vadd.f32 %v873_v59, %v789_v14  ;;  %v887_v20 = vadd.f32 %v886_v52, %v802_v11 }
 0x874   :  { %v891_v41 = vadd.f32 %v887_v20, %v2173_v50  ;;  %v890_v21 = vadd.f32 %v874_v15, %v2181_v42 }
 0x876   :  { %1764 = vtanh.f32 %v891_v41  ;;  %v892_v61 = vmul.f32 0.5, %v890_v21 }
 0x879   :  { %v875_v0 = vpop.f32.mrf.mxu2  ;;  %v888_v2 = vpop.f32.mrf.mxu3 }
 0x87c   :  { %v1765_v8 = vpop.eup %1764 }
 0x87d   :  { %903 = vrot.lane.b32.xlu0 %v1765_v8, %s1918_s29 }
 0x881   :  { %v957_v19 = vpop.f32.mrf.mxu2  ;;  %v970_v13 = vpop.f32.mrf.mxu3 }
 0x882   :  { %v974_v63 = vadd.f32 %v957_v19, %v162_v9  ;;  %v975_v44 = vadd.f32 %v970_v13, %v191_v35  ;;  %v893_v13 = vmul.f32 0.5, %v891_v41 }
 0x884   :  { %1766 = vtanh.f32 %v975_v44  ;;  %v976_v22 = vmul.f32 0.5, %v974_v63 }
 0x885   :  { %1768 = vtanh.f32 %v892_v61 }
 0x886   :  { %1770 = vtanh.f32 %v976_v22 }
 0x889   :  { %v959_v60 = vpop.f32.mrf.mxu2  ;;  %v972_v12 = vpop.f32.mrf.mxu3 }
 0x88a   :  { %v1767_v43 = vpop.eup %1766  ;;  %v977_v60 = vmul.f32 0.5, %v975_v44 }
 0x88b   :  { %987 = vrot.lane.b32.xlu1 %v1767_v43, %s1918_s29  ;;  %v1769_v7 = vpop.eup %1768 }
 0x88c   :  { %v896_v54 = vmul.f32 0.5, %v1769_v7  ;;  %v1771_v11 = vpop.eup %1770 }
 0x88d   :  { %v980_v3 = vmul.f32 0.5, %v1771_v11 }
 0x88e   :  { %v898_v58 = vadd.f32 0.5, %v896_v54 }
 0x88f   :  { %v982_v55 = vadd.f32 0.5, %v980_v3 }
 0x890   :  { %v901_v15 = vmul.f32 %v898_v58, %v2286_v51 }
 0x891   :  { %v985_v8 = vmul.f32 %v982_v55, %v2291_v17 }
 0x8ef   :  { %v904_v24 = vpop.permute.xlu0 %903 }
 0x8f0   :  { %v906_v14 = vmul.f32 %v904_v24, %v898_v58 }
 0x8f2   :  { %908 = vrot.lane.b32.xlu2 %v906_v14, %s1918_s29 }
 0x8fd   :  { %v988_v59 = vpop.permute.xlu1 %987 }
 0x8fe   :  { %v990_v52 = vmul.f32 %v988_v59, %v982_v55 }
 0x900   :  { %992 = vrot.lane.b32.xlu0 %v990_v52, %s1918_s29 }
 0x94c   :  { %v909_v20 = vpop.permute.xlu2 %908 }
 0x94d   :  { %v2336_v0 = vadd.f32 %v909_v20, %v901_v15 }
 0x94f   :  { %1772 = vtanh.f32 %v2336_v0 }
 0x955   :  { %v1773_v2 = vpop.eup %1772 }
 0x956   :  { %914 = vrot.lane.b32.xlu1 %v1773_v2, %s1918_s29 }
 0x972   :  { %v993_v9 = vpop.permute.xlu0 %992 }
 0x973   :  { %v2341_v35 = vadd.f32 %v993_v9, %v985_v8  ;;  %v164_v9 = vadd.f32 %v2157_v25, %v2069_v10 }
 0x975   :  { %1774 = vtanh.f32 %v2341_v35 }
 0x976   :  { %1776 = vtanh.f32 %v893_v13 }
 0x977   :  { %1778 = vtanh.f32 %v977_v60 }
 0x97b   :  { %v1775_v19 = vpop.eup %1774 }
 0x97c   :  { %998 = vrot.lane.b32.xlu2 %v1775_v19, %s1918_s29  ;;  %v1777_v51 = vpop.eup %1776  ;;  %v193_v19 = vadd.f32 %v2159_v27, %v2062_v62 }
 0x97d   :  { %v897_v63 = vmul.f32 0.5, %v1777_v51  ;;  %v1779_v17 = vpop.eup %1778 }
 0x97e   :  { %v981_v7 = vmul.f32 0.5, %v1779_v17 }
 0x97f   :  { %v899_v12 = vadd.f32 0.5, %v897_v63 }
 0x980   :  { %v983_v41 = vadd.f32 0.5, %v981_v7 }
 0x9c8   :  { %v915_v43 = vpop.permute.xlu1 %914 }
 0x9c9   :  { %v917_v21 = vmul.f32 %v915_v43, %v899_v12 }
 0x9cb   :  { %v918_v61 = vpack.c.bf16 %v917_v21, %v917_v21 }
 0x9cd   :  { %1647 = vmatmul.msk.bf16.vlgmr.msrb.gmra.mxu0 %vm254_vm2, %v918_v61  ;;  %1648 = vmatmul.msk.bf16.vlgmr.msrb.gmra.mxu1 %vm254_vm2, %v918_v61 }
 0x9ce   :  { %1094 = vmatpush.bf16.msrb.mxu0 %v2012_v38  ;;  %1107 = vmatpush.bf16.msrb.mxu1 %v1994_v23 }
 0x9d2   :  { %1095 = vmatpush.bf16.msrb.mxu0 %v2023_v46  ;;  %1108 = vmatpush.bf16.msrb.mxu1 %v2014_v39 }
 0x9d6   :  { %v999_v44 = vpop.permute.xlu2 %998  ;;  %1096 = vmatpush.bf16.msrb.mxu0 %v2032_v53  ;;  %1109 = vmatpush.bf16.msrb.mxu1 %v2026_v48 }
 0x9d7   :  { %v1001_v54 = vmul.f32 %v999_v44, %v983_v41 }
 0x9d9   :  { %v1002_v22 = vpack.c.bf16 %v1001_v54, %v1001_v54 }
 0x9da   :  { %1097 = vmatpush.bf16.msrb.mxu0 %v2039_v57  ;;  %1110 = vmatpush.bf16.msrb.mxu1 %v2035_v56 }
 0x9dd   :  { %1651 = vmatmul.msk.bf16.vlgmr.msra.gmra.mxu0 %vm254_vm2, %v1002_v22  ;;  %1652 = vmatmul.msk.bf16.vlgmr.msra.gmra.mxu1 %vm254_vm2, %v1002_v22 }
 0x9de   :  { %1223 = vmatpush.bf16.msra.mxu1 %v1981_v4  ;;  %1210 = vmatpush.bf16.msra.mxu0 %v1992_v18 }
 0x9e2   :  { %1224 = vmatpush.bf16.msra.mxu1 %v1984_v6  ;;  %1211 = vmatpush.bf16.msra.mxu0 %v2001_v26 }
 0x9e6   :  { %1225 = vmatpush.bf16.msra.mxu1 %v1990_v16  ;;  %1212 = vmatpush.bf16.msra.mxu0 %v2010_v36 }
 0x9ea   :  { %1226 = vmatpush.bf16.msra.mxu1 %v2004_v32  ;;  %1213 = vmatpush.bf16.msra.mxu0 %v2021_v45 }
 0x9ed   :  { %1655 = vmatmul.msk.bf16.vlgmr.msrb.gmra.mxu0 %vm254_vm2, %v1002_v22  ;;  %1656 = vmatmul.msk.bf16.vlgmr.msrb.gmra.mxu1 %vm254_vm2, %v1002_v22 }
 0x9ee   :  { %1307 = vmatpush.bf16.msrb.mxu1 %v2078_v28  ;;  %1294 = vmatpush.bf16.msrb.mxu0 %v2080_v33 }
 0x9f2   :  { %1308 = vmatpush.bf16.msrb.mxu1 %v2083_v37  ;;  %1295 = vmatpush.bf16.msrb.mxu0 %v2086_v40 }
 0x9f6   :  { %1309 = vmatpush.bf16.msrb.mxu1 %v2089_v47  ;;  %1296 = vmatpush.bf16.msrb.mxu0 %v2092_v49 }
 0x9fa   :  { %1310 = vmatpush.bf16.msrb.mxu1 %v2110_v1  ;;  %1297 = vmatpush.bf16.msrb.mxu0 %v2112_v5 }
 0xa4a   :  { %v931_v58 = vpop.f32.mrf.mxu0  ;;  %v944_v24 = vpop.f32.mrf.mxu1 }
 0xa52   :  { %v933_v14 = vpop.f32.mrf.mxu0  ;;  %v946_v11 = vpop.f32.mrf.mxu1 }
 0xa5a   :  { %v1015_v3 = vpop.f32.mrf.mxu0  ;;  %v1028_v55 = vpop.f32.mrf.mxu1 }
 0xa5b   :  { %v1016_v59 = vadd.f32 %v1015_v3, %v931_v58  ;;  %v1029_v52 = vadd.f32 %v1028_v55, %v944_v24 }
 0xa5d   :  { %v1033_v15 = vadd.f32 %v1029_v52, %v2173_v50  ;;  %v1032_v61 = vadd.f32 %v1016_v59, %v2181_v42 }
 0xa5f   :  { %1780 = vtanh.f32 %v1033_v15  ;;  %v1034_v17 = vmul.f32 0.5, %v1032_v61 }
 0xa62   :  { %v1017_v20 = vpop.f32.mrf.mxu0  ;;  %v1030_v2 = vpop.f32.mrf.mxu1 }
 0xa65   :  { %v1781_v8 = vpop.eup %1780 }
 0xa66   :  { %1045 = vrot.lane.b32.xlu0 %v1781_v8, %s1918_s29 }
 0xa6a   :  { %v1099_v13 = vpop.f32.mrf.mxu0  ;;  %v1112_v51 = vpop.f32.mrf.mxu1 }
 0xa6b   :  { %v1116_v63 = vadd.f32 %v1099_v13, %v164_v9  ;;  %v1117_v60 = vadd.f32 %v1112_v51, %v193_v19  ;;  %v1035_v19 = vmul.f32 0.5, %v1033_v15 }
 0xa6d   :  { %1782 = vtanh.f32 %v1117_v60  ;;  %v1118_v25 = vmul.f32 0.5, %v1116_v63  ;;  %v1119_v51 = vmul.f32 0.5, %v1117_v60 }
 0xa6e   :  { %1784 = vtanh.f32 %v1034_v17 }
 0xa6f   :  { %1786 = vtanh.f32 %v1118_v25 }
 0xa72   :  { %v1101_v12 = vpop.f32.mrf.mxu0  ;;  %v1114_v43 = vpop.f32.mrf.mxu1 }
 0xa73   :  { %v1783_v21 = vpop.eup %1782 }
 0xa74   :  { %1129 = vrot.lane.b32.xlu1 %v1783_v21, %s1918_s29  ;;  %v1785_v7 = vpop.eup %1784 }
 0xa75   :  { %v1038_v41 = vmul.f32 0.5, %v1785_v7  ;;  %v1787_v22 = vpop.eup %1786 }
 0xa76   :  { %v1122_v58 = vmul.f32 0.5, %v1787_v22 }
 0xa77   :  { %v1040_v44 = vadd.f32 0.5, %v1038_v41 }
 0xa78   :  { %v1124_v24 = vadd.f32 0.5, %v1122_v58 }
 0xa79   :  { %v1043_v3 = vmul.f32 %v1040_v44, %v2336_v0 }
 0xa7a   :  { %v1127_v20 = vmul.f32 %v1124_v24, %v2341_v35 }
 0xad8   :  { %v1046_v27 = vpop.permute.xlu0 %1045 }
 0xad9   :  { %v1048_v54 = vmul.f32 %v1046_v27, %v1040_v44 }
 0xadb   :  { %1050 = vrot.lane.b32.xlu2 %v1048_v54, %s1918_s29 }
 0xae6   :  { %v1130_v14 = vpop.permute.xlu1 %1129 }
 0xae7   :  { %v1132_v11 = vmul.f32 %v1130_v14, %v1124_v24 }
 0xae9   :  { %1134 = vrot.lane.b32.xlu0 %v1132_v11, %s1918_s29 }
 0xb35   :  { %v1051_v55 = vpop.permute.xlu2 %1050 }
 0xb36   :  { %v2386_v59 = vadd.f32 %v1051_v55, %v1043_v3 }
 0xb38   :  { %1788 = vtanh.f32 %v2386_v59 }
 0xb3e   :  { %v1789_v52 = vpop.eup %1788 }
 0xb3f   :  { %1056 = vrot.lane.b32.xlu1 %v1789_v52, %s1918_s29 }
 0xb5b   :  { %v1135_v2 = vpop.permute.xlu0 %1134 }
 0xb5c   :  { %v2391_v8 = vadd.f32 %v1135_v2, %v1127_v20 }
 0xb5e   :  { %1790 = vtanh.f32 %v2391_v8 }
 0xb5f   :  { %1792 = vtanh.f32 %v1035_v19 }
 0xb60   :  { %1794 = vtanh.f32 %v1119_v51 }
 0xb64   :  { %v1791_v9 = vpop.eup %1790 }
 0xb65   :  { %1140 = vrot.lane.b32.xlu2 %v1791_v9, %s1918_s29  ;;  %v1793_v0 = vpop.eup %1792 }
 0xb66   :  { %v1039_v13 = vmul.f32 0.5, %v1793_v0  ;;  %v1795_v35 = vpop.eup %1794 }
 0xb67   :  { %v1123_v61 = vmul.f32 0.5, %v1795_v35 }
 0xb68   :  { %v1041_v63 = vadd.f32 0.5, %v1039_v13 }
 0xb69   :  { %v1125_v15 = vadd.f32 0.5, %v1123_v61 }
 0xbb1   :  { %v1057_v12 = vpop.permute.xlu1 %1056 }
 0xbb2   :  { %v1059_v43 = vmul.f32 %v1057_v12, %v1041_v63 }
 0xbb4   :  { %v1060_v21 = vpack.c.bf16 %v1059_v43, %v1059_v43 }
 0xbb6   :  { %1653 = vmatmul.msk.bf16.vlgmr.msrb.gmra.mxu2 %vm254_vm2, %v1060_v21  ;;  %1654 = vmatmul.msk.bf16.vlgmr.msrb.gmra.mxu3 %vm254_vm2, %v1060_v21 }
 0xbb7   :  { %1236 = vmatpush.bf16.msrb.mxu2 %v2012_v38  ;;  %1249 = vmatpush.bf16.msrb.mxu3 %v1994_v23 }
 0xbbb   :  { %1237 = vmatpush.bf16.msrb.mxu2 %v2023_v46  ;;  %1250 = vmatpush.bf16.msrb.mxu3 %v2014_v39 }
 0xbbf   :  { %v1141_v60 = vpop.permute.xlu2 %1140  ;;  %1238 = vmatpush.bf16.msrb.mxu2 %v2032_v53  ;;  %1251 = vmatpush.bf16.msrb.mxu3 %v2026_v48 }
 0xbc0   :  { %v1143_v17 = vmul.f32 %v1141_v60, %v1125_v15 }
 0xbc2   :  { %v1144_v7 = vpack.c.bf16 %v1143_v17, %v1143_v17 }
 0xbc3   :  { %1239 = vmatpush.bf16.msrb.mxu2 %v2039_v57  ;;  %1252 = vmatpush.bf16.msrb.mxu3 %v2035_v56 }
 0xbc6   :  { %1657 = vmatmul.msk.bf16.vlgmr.msra.gmra.mxu2 %vm254_vm2, %v1144_v7  ;;  %1658 = vmatmul.msk.bf16.vlgmr.msra.gmra.mxu3 %vm254_vm2, %v1144_v7 }
 0xbc7   :  { %1365 = vmatpush.bf16.msra.mxu3 %v1981_v4  ;;  %1352 = vmatpush.bf16.msra.mxu2 %v1992_v18 }
 0xbcb   :  { %1366 = vmatpush.bf16.msra.mxu3 %v1984_v6  ;;  %1353 = vmatpush.bf16.msra.mxu2 %v2001_v26 }
 0xbcf   :  { %1367 = vmatpush.bf16.msra.mxu3 %v1990_v16  ;;  %1354 = vmatpush.bf16.msra.mxu2 %v2010_v36 }
 0xbd3   :  { %1368 = vmatpush.bf16.msra.mxu3 %v2004_v32  ;;  %1355 = vmatpush.bf16.msra.mxu2 %v2021_v45 }
 0xbd6   :  { %1661 = vmatmul.msk.bf16.vlgmr.msrb.gmra.mxu2 %vm254_vm2, %v1144_v7  ;;  %1662 = vmatmul.msk.bf16.vlgmr.msrb.gmra.mxu3 %vm254_vm2, %v1144_v7 }
 0xbd7   :  { %1449 = vmatpush.bf16.msrb.mxu3 %v2078_v28  ;;  %1436 = vmatpush.bf16.msrb.mxu2 %v2080_v33 }
 0xbdb   :  { %1450 = vmatpush.bf16.msrb.mxu3 %v2083_v37  ;;  %1437 = vmatpush.bf16.msrb.mxu2 %v2086_v40 }
 0xbdf   :  { %1451 = vmatpush.bf16.msrb.mxu3 %v2089_v47  ;;  %1438 = vmatpush.bf16.msrb.mxu2 %v2092_v49  ;;  %v167_v47 = vadd.f32 %v2161_v29, %v2069_v10  ;;  %v196_v49 = vadd.f32 %v2163_v30, %v2062_v62 }
 0xbe3   :  { %1452 = vmatpush.bf16.msrb.mxu3 %v2110_v1  ;;  %1439 = vmatpush.bf16.msrb.mxu2 %v2112_v5 }
 0xc39   :  { %v1073_v4 = vpop.f32.mrf.mxu2  ;;  %v1086_v6 = vpop.f32.mrf.mxu3 }
 0xc41   :  { %v1075_v16 = vpop.f32.mrf.mxu2  ;;  %v1088_v18 = vpop.f32.mrf.mxu3 }
 0xc49   :  { %v1157_v26 = vpop.f32.mrf.mxu2  ;;  %v1170_v32 = vpop.f32.mrf.mxu3 }
 0xc4a   :  { %v1158_v36 = vadd.f32 %v1157_v26, %v1073_v4  ;;  %v1171_v45 = vadd.f32 %v1170_v32, %v1086_v6 }
 0xc4c   :  { %v1175_v28 = vadd.f32 %v1171_v45, %v2173_v50  ;;  %v1174_v22 = vadd.f32 %v1158_v36, %v2181_v42 }
 0xc4e   :  { %1796 = vtanh.f32 %v1175_v28  ;;  %v1176_v58 = vmul.f32 0.5, %v1174_v22  ;;  %v1177_v35 = vmul.f32 0.5, %v1175_v28 }
 0xc51   :  { %v1159_v33 = vpop.f32.mrf.mxu2  ;;  %v1172_v37 = vpop.f32.mrf.mxu3 }
 0xc52   :  { %v198_v37 = vadd.f32 %v2167_v34, %v2062_v62 }
 0xc54   :  { %v1797_v40 = vpop.eup %1796 }
 0xc55   :  { %1187 = vrot.lane.b32.xlu0 %v1797_v40, %s1918_s29 }
 0xc59   :  { %v1241_v1 = vpop.f32.mrf.mxu2  ;;  %v1254_v5 = vpop.f32.mrf.mxu3 }
 0xc5a   :  { %v1258_v41 = vadd.f32 %v1241_v1, %v167_v47  ;;  %v1259_v25 = vadd.f32 %v1254_v5, %v196_v49 }
 0xc5c   :  { %1798 = vtanh.f32 %v1259_v25  ;;  %v1260_v29 = vmul.f32 0.5, %v1258_v41  ;;  %v1261_v15 = vmul.f32 0.5, %v1259_v25 }
 0xc5d   :  { %1800 = vtanh.f32 %v1176_v58 }
 0xc5e   :  { %1802 = vtanh.f32 %v1260_v29 }
 0xc61   :  { %v1243_v44 = vpop.f32.mrf.mxu2  ;;  %v1256_v27 = vpop.f32.mrf.mxu3 }
 0xc62   :  { %v1799_v54 = vpop.eup %1798  ;;  %v169_v27 = vadd.f32 %v2165_v31, %v2069_v10 }
 0xc63   :  { %1271 = vrot.lane.b32.xlu1 %v1799_v54, %s1918_s29  ;;  %v1801_v24 = vpop.eup %1800 }
 0xc64   :  { %v1180_v14 = vmul.f32 0.5, %v1801_v24  ;;  %v1803_v55 = vpop.eup %1802 }
 0xc65   :  { %v1264_v52 = vmul.f32 0.5, %v1803_v55 }
 0xc66   :  { %v1182_v11 = vadd.f32 0.5, %v1180_v14 }
 0xc67   :  { %v1266_v20 = vadd.f32 0.5, %v1264_v52 }
 0xc68   :  { %v1185_v19 = vmul.f32 %v1182_v11, %v2386_v59 }
 0xc69   :  { %v1269_v63 = vmul.f32 %v1266_v20, %v2391_v8 }
 0xcc7   :  { %v1188_v30 = vpop.permute.xlu0 %1187 }
 0xcc8   :  { %v1190_v3 = vmul.f32 %v1188_v30, %v1182_v11 }
 0xcca   :  { %1192 = vrot.lane.b32.xlu2 %v1190_v3, %s1918_s29 }
 0xcd5   :  { %v1272_v2 = vpop.permute.xlu1 %1271 }
 0xcd6   :  { %v1274_v9 = vmul.f32 %v1272_v2, %v1266_v20 }
 0xcd8   :  { %1276 = vrot.lane.b32.xlu0 %v1274_v9, %s1918_s29 }
 0xd24   :  { %v1193_v0 = vpop.permute.xlu2 %1192 }
 0xd25   :  { %v2436_v13 = vadd.f32 %v1193_v0, %v1185_v19 }
 0xd27   :  { %1804 = vtanh.f32 %v2436_v13 }
 0xd2d   :  { %v1805_v51 = vpop.eup %1804 }
 0xd2e   :  { %1198 = vrot.lane.b32.xlu1 %v1805_v51, %s1918_s29 }
 0xd4a   :  { %v1277_v12 = vpop.permute.xlu0 %1276 }
 0xd4b   :  { %v2441_v43 = vadd.f32 %v1277_v12, %v1269_v63 }
 0xd4d   :  { %1806 = vtanh.f32 %v2441_v43 }
 0xd4e   :  { %1808 = vtanh.f32 %v1177_v35 }
 0xd4f   :  { %1810 = vtanh.f32 %v1261_v15 }
 0xd53   :  { %v1807_v21 = vpop.eup %1806 }
 0xd54   :  { %1282 = vrot.lane.b32.xlu2 %v1807_v21, %s1918_s29  ;;  %v1809_v59 = vpop.eup %1808 }
 0xd55   :  { %v1181_v61 = vmul.f32 0.5, %v1809_v59  ;;  %v1811_v8 = vpop.eup %1810 }
 0xd56   :  { %v1265_v6 = vmul.f32 0.5, %v1811_v8 }
 0xd57   :  { %v1183_v60 = vadd.f32 0.5, %v1181_v61 }
 0xd58   :  { %v1267_v16 = vadd.f32 0.5, %v1265_v6 }
 0xda0   :  { %v1199_v17 = vpop.permute.xlu1 %1198 }
 0xda1   :  { %v1201_v7 = vmul.f32 %v1199_v17, %v1183_v60 }
 0xda3   :  { %v1202_v4 = vpack.c.bf16 %v1201_v7, %v1201_v7 }
 0xda5   :  { %1659 = vmatmul.msk.bf16.vlgmr.msra.gmra.mxu0 %vm254_vm2, %v1202_v4  ;;  %1660 = vmatmul.msk.bf16.vlgmr.msra.gmra.mxu1 %vm254_vm2, %v1202_v4 }
 0xda6   :  { %1378 = vmatpush.bf16.msra.mxu0 %v2012_v38  ;;  %1391 = vmatpush.bf16.msra.mxu1 %v1994_v23 }
 0xdaa   :  { %1379 = vmatpush.bf16.msra.mxu0 %v2023_v46  ;;  %1392 = vmatpush.bf16.msra.mxu1 %v2014_v39 }
 0xdae   :  { %v1283_v18 = vpop.permute.xlu2 %1282  ;;  %1380 = vmatpush.bf16.msra.mxu0 %v2032_v53  ;;  %1393 = vmatpush.bf16.msra.mxu1 %v2026_v48 }
 0xdaf   :  { %v1285_v26 = vmul.f32 %v1283_v18, %v1267_v16 }
 0xdb1   :  { %v1286_v32 = vpack.c.bf16 %v1285_v26, %v1285_v26 }
 0xdb2   :  { %1381 = vmatpush.bf16.msra.mxu0 %v2039_v57  ;;  %1394 = vmatpush.bf16.msra.mxu1 %v2035_v56 }
 0xdb5   :  { %1663 = vmatmul.msk.bf16.vlgmr.msrb.gmra.mxu0 %vm254_vm2, %v1286_v32  ;;  %1664 = vmatmul.msk.bf16.vlgmr.msrb.gmra.mxu1 %vm254_vm2, %v1286_v32 }
 0xdc5   :  { %1667 = vmatmul.msk.bf16.vlgmr.msra.gmra.mxu0 %vm254_vm2, %v1286_v32  ;;  %1668 = vmatmul.msk.bf16.vlgmr.msra.gmra.mxu1 %vm254_vm2, %v1286_v32 }
 0xe22   :  { %v1215_v23 = vpop.f32.mrf.mxu0  ;;  %v1228_v38 = vpop.f32.mrf.mxu1 }
 0xe2a   :  { %v1217_v39 = vpop.f32.mrf.mxu0  ;;  %v1230_v46 = vpop.f32.mrf.mxu1 }
 0xe32   :  { %v1299_v53 = vpop.f32.mrf.mxu0  ;;  %v1312_v48 = vpop.f32.mrf.mxu1 }
 0xe33   :  { %v1300_v36 = vadd.f32 %v1299_v53, %v1215_v23  ;;  %v1313_v45 = vadd.f32 %v1312_v48, %v1228_v38 }
 0xe35   :  { %v1317_v57 = vadd.f32 %v1313_v45, %v2173_v50  ;;  %v1316_v25 = vadd.f32 %v1300_v36, %v2181_v42 }
 0xe37   :  { %1812 = vtanh.f32 %v1317_v57  ;;  %v1318_v44 = vmul.f32 0.5, %v1316_v25  ;;  %v1319_v51 = vmul.f32 0.5, %v1317_v57  ;;  %v1706_v25 = vld [vmem:[%s2496_s7] ss:$0 sm:$0xff] }
 0xe3a   :  { %v1301_v56 = vpop.f32.mrf.mxu0  ;;  %v1314_v28 = vpop.f32.mrf.mxu1 }
 0xe3d   :  { %v1813_v33 = vpop.eup %1812 }
 0xe3e   :  { %1329 = vrot.lane.b32.xlu0 %v1813_v33, %s1918_s29 }
 0xe42   :  { %v1383_v40 = vpop.f32.mrf.mxu0  ;;  %v1396_v47 = vpop.f32.mrf.mxu1 }
 0xe43   :  { %v1401_v49 = vadd.f32 %v1396_v47, %v198_v37  ;;  %v1400_v22 = vadd.f32 %v1383_v40, %v169_v27 }
 0xe45   :  { %1814 = vtanh.f32 %v1401_v49  ;;  %v1402_v62 = vmul.f32 0.5, %v1400_v22  ;;  %v1403_v21 = vmul.f32 0.5, %v1401_v49 }
 0xe46   :  { %1816 = vtanh.f32 %v1318_v44 }
 0xe47   :  { %1818 = vtanh.f32 %v1402_v62 }
 0xe4a   :  { %v1385_v1 = vpop.f32.mrf.mxu0  ;;  %v1398_v5 = vpop.f32.mrf.mxu1 }
 0xe4b   :  { %v1815_v41 = vpop.eup %1814 }
 0xe4c   :  { %1413 = vrot.lane.b32.xlu1 %v1815_v41, %s1918_s29  ;;  %v1817_v54 = vpop.eup %1816 }
 0xe4d   :  { %v1322_v58 = vmul.f32 0.5, %v1817_v54  ;;  %v1819_v29 = vpop.eup %1818 }
 0xe4e   :  { %v1406_v11 = vmul.f32 0.5, %v1819_v29 }
 0xe4f   :  { %v1324_v34 = vadd.f32 0.5, %v1322_v58  ;;  %v1707_v58 = vld [vmem:[#allocation2] ss:$0 sm:$0xff] }
 0xe50   :  { %v1408_v30 = vadd.f32 0.5, %v1406_v11 }
 0xe51   :  { %v1327_v52 = vmul.f32 %v1324_v34, %v2436_v13 }
 0xe52   :  { %v1411_v2 = vmul.f32 %v1408_v30, %v2441_v43 }
 0xeb0   :  { %v1330_v24 = vpop.permute.xlu0 %1329 }
 0xeb1   :  { %v1332_v14 = vmul.f32 %v1330_v24, %v1324_v34 }
 0xeb3   :  { %1334 = vrot.lane.b32.xlu2 %v1332_v14, %s1918_s29 }
 0xebe   :  { %v1414_v3 = vpop.permute.xlu1 %1413 }
 0xebf   :  { %v1416_v55 = vmul.f32 %v1414_v3, %v1408_v30 }
 0xec1   :  { %1418 = vrot.lane.b32.xlu0 %v1416_v55, %s1918_s29 }
 0xf0d   :  { %v1335_v10 = vpop.permute.xlu2 %1334 }
 0xf0e   :  { %v1337_v31 = vadd.f32 %v1335_v10, %v1327_v52 }
 0xf10   :  { %1820 = vtanh.f32 %v1337_v31 }
 0xf16   :  { %v1821_v20 = vpop.eup %1820 }
 0xf17   :  { %1340 = vrot.lane.b32.xlu1 %v1821_v20, %s1918_s29 }
 0xf33   :  { %v1419_v9 = vpop.permute.xlu0 %1418 }
 0xf34   :  { %v1421_v19 = vadd.f32 %v1419_v9, %v1411_v2 }
 0xf36   :  { %1822 = vtanh.f32 %v1421_v19 }
 0xf37   :  { %1824 = vtanh.f32 %v1319_v51 }
 0xf38   :  { %1826 = vtanh.f32 %v1403_v21 }
 0xf3c   :  { %v1823_v0 = vpop.eup %1822 }
 0xf3d   :  { %1424 = vrot.lane.b32.xlu2 %v1823_v0, %s1918_s29  ;;  %v1825_v63 = vpop.eup %1824 }
 0xf3e   :  { %v1323_v12 = vmul.f32 0.5, %v1825_v63  ;;  %v1827_v43 = vpop.eup %1826 }
 0xf3f   :  { %v1407_v15 = vmul.f32 0.5, %v1827_v43 }
 0xf40   :  { %v1325_v13 = vadd.f32 0.5, %v1323_v12 }
 0xf41   :  { %v1409_v60 = vadd.f32 0.5, %v1407_v15 }
 0xf89   :  { %v1341_v35 = vpop.permute.xlu1 %1340 }
 0xf8a   :  { %v1343_v59 = vmul.f32 %v1341_v35, %v1325_v13 }
 0xf8c   :  { %v1344_v61 = vpack.c.bf16 %v1343_v59, %v1343_v59 }
 0xf8e   :  { %1665 = vmatmul.msk.bf16.vlgmr.msra.gmra.mxu2 %vm254_vm2, %v1344_v61  ;;  %1666 = vmatmul.msk.bf16.vlgmr.msra.gmra.mxu3 %vm254_vm2, %v1344_v61 }
 0xf97   :  { %v1425_v17 = vpop.permute.xlu2 %1424 }
 0xf98   :  { %v1427_v7 = vmul.f32 %v1425_v17, %v1409_v60 }
 0xf9a   :  { %v1428_v4 = vpack.c.bf16 %v1427_v7, %v1427_v7 }
 0xf9e   :  { %1669 = vmatmul.msk.bf16.vlgmr.msrb.gmra.mxu2 %vm254_vm2, %v1428_v4  ;;  %1670 = vmatmul.msk.bf16.vlgmr.msrb.gmra.mxu3 %vm254_vm2, %v1428_v4 }
0x1011   :  { %v1357_v8 = vpop.f32.mrf.mxu2  ;;  %v1370_v6 = vpop.f32.mrf.mxu3 }
0x1019   :  { %v1359_v16 = vpop.f32.mrf.mxu2  ;;  %v1372_v18 = vpop.f32.mrf.mxu3 }
0x1021   :  { %v1441_v26 = vpop.f32.mrf.mxu2  ;;  %v1454_v32 = vpop.f32.mrf.mxu3 }
0x1022   :  { %v1442_v23 = vadd.f32 %v1441_v26, %v1357_v8  ;;  %v1455_v38 = vadd.f32 %v1454_v32, %v1370_v6 }
0x1024   :  { %v1459_v39 = vadd.f32 %v1455_v38, %v2173_v50  ;;  %v1458_v36 = vadd.f32 %v1442_v23, %v2181_v42 }
0x1026   :  { %1828 = vtanh.f32 %v1459_v39  ;;  %v1460_v45 = vmul.f32 0.5, %v1458_v36  ;;  %v1461_v1 = vmul.f32 0.5, %v1459_v39 }
0x1028   :  { %1830 = vtanh.f32 %v1460_v45 }
0x1029   :  { %v1443_v46 = vpop.f32.mrf.mxu2  ;;  %v1456_v53 = vpop.f32.mrf.mxu3 }
0x102c   :  { %v1829_v48 = vpop.eup %1828 }
0x102d   :  { %1471 = vrot.lane.b32.xlu0 %v1829_v48, %s1918_s29 }
0x102e   :  { %v1831_v57 = vpop.eup %1830 }
0x102f   :  { %v1464_v56 = vmul.f32 0.5, %v1831_v57 }
0x1031   :  { %v1466_v28 = vadd.f32 0.5, %v1464_v56 }
0x1033   :  { %v1469_v40 = vmul.f32 %v1466_v28, %v1337_v31 }
0x109f   :  { %v1472_v33 = vpop.permute.xlu0 %1471 }
0x10a0   :  { %v1474_v37 = vmul.f32 %v1472_v33, %v1466_v28 }
0x10a2   :  { %1476 = vrot.lane.b32.xlu1 %v1474_v37, %s1918_s29 }
0x1114   :  { %v1477_v47 = vpop.permute.xlu1 %1476 }
0x1115   :  { %v1479_v50 = vadd.f32 %v1477_v47, %v1469_v40 }
0x1117   :  { %1832 = vtanh.f32 %v1479_v50 }
0x1118   :  { %1834 = vtanh.f32 %v1461_v1 }
0x111d   :  { %v1833_v49 = vpop.eup %1832 }
0x111e   :  { %1482 = vrot.lane.b32.xlu2 %v1833_v49, %s1918_s29  ;;  %v1835_v5 = vpop.eup %1834 }
0x111f   :  { %v1465_v42 = vmul.f32 0.5, %v1835_v5 }
0x1121   :  { %v1467_v41 = vadd.f32 0.5, %v1465_v42 }
0x1178   :  { %v1483_v44 = vpop.permute.xlu2 %1482 }
0x1179   :  { %v1485_v27 = vmul.f32 %v1483_v44, %v1467_v41 }
0x117b   :  { %v1490_v54 = vmul.f32 %v1706_v25, %v1485_v27 }
0x117d   :  { %v1491_v22 = vsel %vm254_vm2, %v1490_v54, 0.0 }
0x117e   :  { %1492 = vadd.xlane.f32.xlu0 %v1491_v22 }
0x11f1   :  { %v1493_v62 = vpop.xlane.xlu0 %1492 }
0x11f2   :  { %v1498_v34 = vadd.f32 %v1707_v58, %v1493_v62 }
0x11f4   :  { %1500 = vst.msk [vmem:[%s2498_s9] sm:$0x3] %vm1499_vm3, %v1498_v34 }
0x11f5   :  { %1505 = vsyncpa [#allocation4], 1 }
0x11f6   :  { %1506 = vsyncpa [#allocation6], 1 }

</bundles_post_ra>
